<compile_context>
chip_gen: v7x
topology: tpu7x:2x2x1
jax: 0.10.0
libtpu: 0.0.40
codegen_flags: <defaults>
</compile_context>

<pallas_src>
import math
from functools import partial

import jax
import jax.numpy as jnp
from jax.experimental import pallas as pl
from jax.experimental.pallas import tpu as pltpu

BN_EPS = 1e-5
VMEM_LIMIT = 32 * 1024 * 1024   # comfortable headroom even on v7x (64 MiB phys)


def _silu_f32(y):
    """Numerically-stable SiLU; reciprocal goes to the EUP slot."""
    z = jnp.exp(-jnp.abs(y))                  # z in (0, 1], never overflows
    inv = pl.reciprocal(1.0 + z, approx=True)
    sig = jnp.where(y >= 0.0, inv, z * inv)
    return y * sig


# ---------------------------------------------------------------------------
# Pallas kernel 1: matmul (bf16 operands, f32 accum) with fused BatchNorm
# (scale/bias), activation and optional residual add.
# Used for: stem conv (im2col), all fused-MBConv convs (im2col), all 1x1
# convs (expand / project / head).
# ---------------------------------------------------------------------------
def _mm_kernel(a_ref, b_ref, s_ref, c_ref, *rest, act, has_res):
    if has_res:
        r_ref, o_ref = rest
    else:
        (o_ref,) = rest
    y = jnp.dot(a_ref[...], b_ref[...], preferred_element_type=jnp.float32)
    y = y * s_ref[...] + c_ref[...]
    if act == "silu":
        y = _silu_f32(y)
    if has_res:
        y = y + r_ref[...]
    o_ref[...] = y.astype(o_ref.dtype)


def matmul_bn_act(a, b, scale, bias, act="none", residual=None):
    """out = act((a @ b) * scale + bias) [+ residual].  No host padding."""
    M, K = a.shape
    K2, N = b.shape
    assert K == K2
    # Tile sizes clamped to the problem; K is kept whole inside the block
    # (largest K in this net is 1728 -> ~1.8 MiB bf16 per A tile).
    tm = M if M <= 512 else 512
    tn = N if N <= 256 else 256

    a16 = a.astype(jnp.bfloat16)
    b16 = b.astype(jnp.bfloat16)
    s = scale.astype(jnp.float32).reshape(1, N)
    c = bias.astype(jnp.float32).reshape(1, N)

    in_specs = [
        pl.BlockSpec((tm, K), lambda i, j: (i, 0)),
        pl.BlockSpec((K, tn), lambda i, j: (0, j)),
        pl.BlockSpec((1, tn), lambda i, j: (0, j)),
        pl.BlockSpec((1, tn), lambda i, j: (0, j)),
    ]
    args = [a16, b16, s, c]
    has_res = residual is not None
    if has_res:
        in_specs.append(pl.BlockSpec((tm, tn), lambda i, j: (i, j)))
        args.append(residual.astype(jnp.float32))

    grid = (pl.cdiv(M, tm), pl.cdiv(N, tn))
    out = pl.pallas_call(
        partial(_mm_kernel, act=act, has_res=has_res),
        out_shape=jax.ShapeDtypeStruct((M, N), jnp.float32),
        grid_spec=pltpu.PrefetchScalarGridSpec(
            num_scalar_prefetch=0,
            grid=grid,
            in_specs=in_specs,
            out_specs=pl.BlockSpec((tm, tn), lambda i, j: (i, j)),
        ),
        compiler_params=pltpu.CompilerParams(
            dimension_semantics=("parallel", "parallel"),
            vmem_limit_bytes=VMEM_LIMIT),
    )(*args)
    return out


# ---------------------------------------------------------------------------
# Pallas kernel 2: depthwise 3x3 conv (tap-accumulate) + fused BN + SiLU.
# Patches are taps-leading (T, M, C) so each tap is a clean (tm, tc) tile.
# ---------------------------------------------------------------------------
def _dw_kernel(p_ref, w_ref, b_ref, o_ref, *, taps):
    acc = jnp.zeros(o_ref.shape, jnp.float32)
    for t in range(taps):                              # static unrolled taps
        acc = acc + p_ref[t].astype(jnp.float32) * w_ref[t, :]
    y = acc + b_ref[...]
    y = _silu_f32(y)
    o_ref[...] = y.astype(o_ref.dtype)


def dw_pallas(patches, w_scaled, bias):
    """patches: (T, M, C) bf16; w_scaled: (T, C) f32; bias: (C,) f32."""
    T, M, C = patches.shape
    tm = M if M <= 512 else 512
    tc = C if C <= 512 else 512

    out = pl.pallas_call(
        partial(_dw_kernel, taps=T),
        out_shape=jax.ShapeDtypeStruct((M, C), jnp.float32),
        grid_spec=pltpu.PrefetchScalarGridSpec(
            num_scalar_prefetch=0,
            grid=(pl.cdiv(M, tm), pl.cdiv(C, tc)),
            in_specs=[
                pl.BlockSpec((T, tm, tc), lambda i, j: (0, i, j)),
                pl.BlockSpec((T, tc), lambda i, j: (0, j)),
                pl.BlockSpec((1, tc), lambda i, j: (0, j)),
            ],
            out_specs=pl.BlockSpec((tm, tc), lambda i, j: (i, j)),
        ),
        compiler_params=pltpu.CompilerParams(
            dimension_semantics=("parallel", "parallel"),
            vmem_limit_bytes=VMEM_LIMIT),
    )(patches.astype(jnp.bfloat16),
      w_scaled.astype(jnp.float32),
      bias.astype(jnp.float32).reshape(1, C))
    return out


# ---------------------------------------------------------------------------
# JAX glue: im2col patch extraction, layer wrappers
# ---------------------------------------------------------------------------
def _extract_patches(x, k, stride):
    """x: NHWC -> patches (N, Ho, Wo, k*k, C), PyTorch (k-1)//2 padding."""
    N, H, W, C = x.shape
    pad = (k - 1) // 2
    xp = jnp.pad(x, ((0, 0), (pad, pad), (pad, pad), (0, 0)))
    Ho = (H + 2 * pad - k) // stride + 1
    Wo = (W + 2 * pad - k) // stride + 1
    taps = []
    for dy in range(k):
        for dx in range(k):
            taps.append(xp[:, dy:dy + (Ho - 1) * stride + 1:stride,
                            dx:dx + (Wo - 1) * stride + 1:stride, :])
    return jnp.stack(taps, axis=3), Ho, Wo


def conv_bn_act(x, p, stride, act, residual=None):
    """Standard conv (weights HWIO) + folded BN + act [+ residual] via Pallas."""
    k = p["w"].shape[0]
    N, H, W, Cin = x.shape
    Cout = p["w"].shape[-1]
    if k == 1 and stride == 1:
        a = x.reshape(N * H * W, Cin)
        Ho, Wo = H, W
    else:
        patches, Ho, Wo = _extract_patches(x, k, stride)
        a = patches.reshape(N * Ho * Wo, k * k * Cin)
    wm = p["w"].reshape(k * k * Cin, Cout)
    r = None if residual is None else residual.reshape(N * Ho * Wo, Cout)
    y = matmul_bn_act(a, wm, p["scale"], p["bias"], act=act, residual=r)
    return y.reshape(N, Ho, Wo, Cout)


def depthwise_bn_silu(x, p, stride):
    # TODO(synk): im2col for the depthwise conv is still materialized in HBM;
    #             per-tap BlockSpecs over the padded input would avoid it.
    k = p["w"].shape[0]
    N, H, W, C = x.shape
    pad = (k - 1) // 2
    xp = jnp.pad(x, ((0, 0), (pad, pad), (pad, pad), (0, 0)))
    Ho = (H + 2 * pad - k) // stride + 1
    Wo = (W + 2 * pad - k) // stride + 1
    taps = []
    for dy in range(k):
        for dx in range(k):
            taps.append(xp[:, dy:dy + (Ho - 1) * stride + 1:stride,
                            dx:dx + (Wo - 1) * stride + 1:stride, :]
                        .reshape(N * Ho * Wo, C))
    patches = jnp.stack(taps, axis=0)                        # (T, M, C) taps-leading
    w_scaled = p["w"].reshape(k * k, C) * p["scale"][None, :]   # fold BN scale
    y = dw_pallas(patches.astype(jnp.bfloat16), w_scaled, p["bias"])
    return y.reshape(N, Ho, Wo, C)


def squeeze_excite(x, p):
    # Tiny (batch x channels) FCs: routed to plain XLA (too small for Pallas).
    s = jnp.mean(x, axis=(1, 2))                             # global avg pool
    s = jax.nn.silu(s @ p["w1"] + p["b1"])
    s = jax.nn.sigmoid(s @ p["w2"] + p["b2"])
    return x * s[:, None, None, :]


# ---------------------------------------------------------------------------
# Parameter construction (deterministic, mirrors the torch module's __init__)
# ---------------------------------------------------------------------------
def _make_divisible(v, divisor=8, min_value=None):
    if min_value is not None and v < min_value:
        v = min_value
    else:
        v = max(divisor, int(v + divisor / 2) // divisor * divisor)
    return v


class _PG:
    def __init__(self, key):
        self.key = key
        self.i = 0

    def next(self):
        self.i += 1
        return jax.random.fold_in(self.key, self.i)


def _bn_fold(cout):
    gamma = jnp.ones((cout,), jnp.float32)
    beta = jnp.zeros((cout,), jnp.float32)
    mean = jnp.zeros((cout,), jnp.float32)
    var = jnp.ones((cout,), jnp.float32)
    scale = gamma / jnp.sqrt(var + BN_EPS)
    bias = beta - mean * scale
    return scale, bias


def make_conv_bn(pg, cin, cout, k):
    fan_out = cout * k * k
    w = jax.random.normal(pg.next(), (k, k, cin, cout), jnp.float32) * math.sqrt(2.0 / fan_out)
    scale, bias = _bn_fold(cout)
    return {"w": w, "scale": scale, "bias": bias}


def make_dw_bn(pg, c, k):
    fan_out = k * k
    w = jax.random.normal(pg.next(), (k, k, c), jnp.float32) * math.sqrt(2.0 / fan_out)
    scale, bias = _bn_fold(c)
    return {"w": w, "scale": scale, "bias": bias}


def make_se(pg, c, csq):
    w1 = jax.random.normal(pg.next(), (c, csq), jnp.float32) * math.sqrt(2.0 / csq)
    b1 = jnp.zeros((csq,), jnp.float32)
    w2 = jax.random.normal(pg.next(), (csq, c), jnp.float32) * math.sqrt(2.0 / c)
    b2 = jnp.zeros((c,), jnp.float32)
    return {"w1": w1, "b1": b1, "w2": w2, "b2": b2}


def build_efficientnet_v2_s(key, num_classes=3):
    pg = _PG(key)
    # (kind, expand_ratio, kernel, stride, in_ch, out_ch, num_layers)
    settings = [
        ("fused", 1, 3, 1, 24, 24, 2),
        ("fused", 4, 3, 2, 24, 48, 4),
        ("fused", 4, 3, 2, 48, 64, 4),
        ("mb",    4, 3, 2, 64, 128, 6),
        ("mb",    6, 3, 1, 128, 160, 9),
        ("mb",    6, 3, 2, 160, 256, 15),
    ]
    params = {"stem": make_conv_bn(pg, 3, 24, 3)}
    blocks = []
    for kind, er, k, s, cin, cout, nl in settings:
        for li in range(nl):
            b_cin = cin if li == 0 else cout
            b_stride = s if li == 0 else 1
            exp = _make_divisible(b_cin * er)
            blk = {"kind": kind, "stride": b_stride,
                   "use_res": (b_stride == 1 and b_cin == cout)}
            if kind == "fused":
                if exp != b_cin:
                    blk["expand"] = True
                    blk["conv1"] = make_conv_bn(pg, b_cin, exp, k)
                    blk["conv2"] = make_conv_bn(pg, exp, cout, 1)
                else:
                    blk["expand"] = False
                    blk["conv1"] = make_conv_bn(pg, b_cin, cout, k)
            else:
                blk["expand_conv"] = make_conv_bn(pg, b_cin, exp, 1)
                blk["dw"] = make_dw_bn(pg, exp, k)
                blk["se"] = make_se(pg, exp, max(1, b_cin // 4))
                blk["proj"] = make_conv_bn(pg, exp, cout, 1)
            blocks.append(blk)
    params["blocks"] = blocks
    params["head"] = make_conv_bn(pg, 256, 1280, 1)
    init_range = 1.0 / math.sqrt(num_classes)
    params["fc_w"] = jax.random.uniform(pg.next(), (1280, num_classes), jnp.float32,
                                        minval=-init_range, maxval=init_range)
    params["fc_b"] = jnp.zeros((num_classes,), jnp.float32)
    return params


# ---------------------------------------------------------------------------
# Forward pass
# ---------------------------------------------------------------------------
def efficientnet_v2_s_forward(params, x_nchw):
    x = jnp.transpose(x_nchw, (0, 2, 3, 1)).astype(jnp.float32)   # NCHW -> NHWC
    x = conv_bn_act(x, params["stem"], stride=2, act="silu")
    for blk in params["blocks"]:
        # Residual add is fused into the epilogue of the block's last matmul.
        res = x if blk["use_res"] else None     # stochastic depth = identity (inference)
        if blk["kind"] == "fused":
            if blk["expand"]:
                h = conv_bn_act(x, blk["conv1"], stride=blk["stride"], act="silu")
                h = conv_bn_act(h, blk["conv2"], stride=1, act="none", residual=res)
            else:
                h = conv_bn_act(x, blk["conv1"], stride=blk["stride"], act="silu",
                                residual=res)
        else:
            h = conv_bn_act(x, blk["expand_conv"], stride=1, act="silu")
            h = depthwise_bn_silu(h, blk["dw"], stride=blk["stride"])
            h = squeeze_excite(h, blk["se"])
            h = conv_bn_act(h, blk["proj"], stride=1, act="none", residual=res)
        x = h
    x = conv_bn_act(x, params["head"], stride=1, act="silu")
    x = jnp.mean(x, axis=(1, 2))                # AdaptiveAvgPool2d(1) + flatten
    # Dropout is identity at inference; tiny classifier stays in XLA.
    logits = x @ params["fc_w"] + params["fc_b"]
    return logits


if __name__ == "__main__":
    key = jax.random.PRNGKey(0)
    params = build_efficientnet_v2_s(key, num_classes=3)
    x = jax.random.normal(jax.random.fold_in(key, 999), (2, 3, 32, 32), jnp.float32)
    out = efficientnet_v2_s_forward(params, x)
    out = jax.block_until_ready(out)
    assert out.shape == (2, 3), out.shape
    print("KERNEL_OK")
</pallas_src>

<mosaic_0001>
module attributes {stable_mosaic.version = 11 : i64} {
  func.func @_mm_kernel(%arg0: i32, %arg1: i32, %arg2: memref<512x27xbf16, #tpu.memory_space<vmem>>, %arg3: memref<27x24xbf16, #tpu.memory_space<vmem>>, %arg4: memref<1x24xf32, #tpu.memory_space<vmem>>, %arg5: memref<1x24xf32, #tpu.memory_space<vmem>>, %arg6: memref<512x24xf32, #tpu.memory_space<vmem>>) attributes {dimension_semantics = [#tpu.dimension_semantics<parallel>, #tpu.dimension_semantics<parallel>], iteration_bounds = array<i64: 1, 1>, scalar_prefetch = 0 : i64, scratch_operands = 0 : i64, tpu.core_type = #tpu.core_type<tc>, window_params = [{transform_indices = @transform_0, window_bounds = array<i64: 512, 27>}, {transform_indices = @transform_1, window_bounds = array<i64: 27, 24>}, {transform_indices = @transform_2, window_bounds = array<i64: 1, 24>}, {transform_indices = @transform_3, window_bounds = array<i64: 1, 24>}, {transform_indices = @transform_4, window_bounds = array<i64: 512, 24>}]} {
    %c0 = arith.constant 0 : index
    %c0_0 = arith.constant 0 : index
    %0 = vector.load %arg2[%c0, %c0_0] : memref<512x27xbf16, #tpu.memory_space<vmem>>, vector<512x27xbf16>
    %c0_1 = arith.constant 0 : index
    %c0_2 = arith.constant 0 : index
    %1 = vector.load %arg3[%c0_1, %c0_2] : memref<27x24xbf16, #tpu.memory_space<vmem>>, vector<27x24xbf16>
    %cst = arith.constant dense<0.000000e+00> : vector<512x24xf32>
    %2 = tpu.matmul %0, %1, %cst {dimension_numbers = #tpu.dot_dimension_numbers<[1], [0], [0], [1], [0, 0, 1, 1], [], []>} : vector<512x27xbf16>, vector<27x24xbf16>, vector<512x24xf32> -> vector<512x24xf32>
    %c0_3 = arith.constant 0 : index
    %c0_4 = arith.constant 0 : index
    %3 = vector.load %arg4[%c0_3, %c0_4] : memref<1x24xf32, #tpu.memory_space<vmem>>, vector<1x24xf32>
    %4 = vector.broadcast %3 : vector<1x24xf32> to vector<512x24xf32>
    %5 = arith.mulf %2, %4 : vector<512x24xf32>
    %c0_5 = arith.constant 0 : index
    %c0_6 = arith.constant 0 : index
    %6 = vector.load %arg5[%c0_5, %c0_6] : memref<1x24xf32, #tpu.memory_space<vmem>>, vector<1x24xf32>
    %7 = vector.broadcast %6 : vector<1x24xf32> to vector<512x24xf32>
    %8 = arith.addf %5, %7 : vector<512x24xf32>
    %9 = math.absf %8 : vector<512x24xf32>
    %cst_7 = arith.constant 0.000000e+00 : f32
    %10 = vector.broadcast %cst_7 : f32 to vector<512x24xf32>
    %11 = arith.subf %10, %9 : vector<512x24xf32>
    %12 = math.exp %11 : vector<512x24xf32>
    %cst_8 = arith.constant 1.000000e+00 : f32
    %13 = vector.broadcast %cst_8 : f32 to vector<512x24xf32>
    %14 = arith.addf %13, %12 : vector<512x24xf32>
    %15 = tpu.reciprocal %14 {approx = true} : vector<512x24xf32> -> vector<512x24xf32>
    %cst_9 = arith.constant 0.000000e+00 : f32
    %16 = vector.broadcast %cst_9 : f32 to vector<512x24xf32>
    %17 = arith.cmpf oge, %8, %16 : vector<512x24xf32>
    %18 = arith.mulf %12, %15 : vector<512x24xf32>
    %19 = arith.select %17, %15, %18 : vector<512x24xi1>, vector<512x24xf32>
    %20 = arith.mulf %8, %19 : vector<512x24xf32>
    %c0_10 = arith.constant 0 : index
    %c0_11 = arith.constant 0 : index
    %21 = vector.load %arg6[%c0_10, %c0_11] : memref<512x24xf32, #tpu.memory_space<vmem>>, vector<512x24xf32>
    tpu.vector_store %arg6[%c0_10, %c0_11], %20 {strides = array<i32>} : memref<512x24xf32, #tpu.memory_space<vmem>>, vector<512x24xf32>,
    return
  }
  func.func @transform_0(%arg0: i32, %arg1: i32) -> (i32, i32) {
    %c0_i32 = arith.constant 0 : i32
    %c0_i32_0 = arith.constant 0 : i32
    return %arg0, %c0_i32 : i32, i32
  }
  func.func @transform_1(%arg0: i32, %arg1: i32) -> (i32, i32) {
    %c0_i32 = arith.constant 0 : i32
    %c0_i32_0 = arith.constant 0 : i32
    return %c0_i32, %arg1 : i32, i32
  }
  func.func @transform_2(%arg0: i32, %arg1: i32) -> (i32, i32) {
    %c0_i32 = arith.constant 0 : i32
    %c0_i32_0 = arith.constant 0 : i32
    return %c0_i32, %arg1 : i32, i32
  }
  func.func @transform_3(%arg0: i32, %arg1: i32) -> (i32, i32) {
    %c0_i32 = arith.constant 0 : i32
    %c0_i32_0 = arith.constant 0 : i32
    return %c0_i32, %arg1 : i32, i32
  }
  func.func @transform_4(%arg0: i32, %arg1: i32) -> (i32, i32) {
    %c0_i32 = arith.constant 0 : i32
    return %arg0, %arg1 : i32, i32
  }
}

</mosaic_0001>

<bundles_post_ra>
// kernel: tpu_custom_call.1
= control target key start
LH: loop header
LB: loop body
LE: loop exit
PB: predicated region body
PF: predicated region fallthrough
CT: control target
= control target key end

     0   :  { %vm354_vm0 = vcmask 1044480   ;;  %vm355_vm1 = vcmask 1045504   ;;  %vm257_vm2 = vcmask 220160   ;;  %v1968_v1 = vmov 65535   ;;  %s3303_s1 = inlined_call_operand.vmem [shape: bf16[27,24], index: 1, kind: input, shape index: {}]   ;;  %s3304_s0 = inlined_call_operand.vmem [shape: bf16[512,27], index: 0, kind: input, shape index: {}]   ;;  %s3305_s2 = inlined_call_operand.vmem [shape: f32[1,24], index: 2, kind: input, shape index: {}]   ;;  %s3306_s3 = inlined_call_operand.vmem [shape: f32[1,24], index: 3, kind: input, shape index: {}]   ;;  %s3307_s4 = inlined_call_operand.vmem [shape: f32[512,24], index: 4, kind: output, shape index: {}]  }
   0x1   :  { %v1676_v0 = vld [vmem:[%s3303_s1] sm:$0xff]   ;;  %v356_v2 = vsel %vm354_vm0, 4294967295, %v1968_v1  ;;  %v1677_v3 = vld [vmem:[%s3303_s1 + $0x8] sm:$0x3f]   ;;  %v1682_v10 = vld [vmem:[%s3304_s0 + $0x10] sm:$0xff]   ;;  %vm1432_vm4 = vcmask 195584  }
   0x2   :  { %1603 = vmatprep.subr.bf16.mxu0 %v1676_v0  ;;  %1671 = vmatprep.subr.bf16.mxu1 %v1676_v0  ;;  %v357_v4 = vsel %vm355_vm1, %v356_v2, 0  ;;  %v1678_v5 = vld [vmem:[%s3304_s0] sm:$0xff]   ;;  %v1680_v8 = vld [vmem:[%s3304_s0 + $0x8] sm:$0xff]   ;;  %v1683_v11 = vld [vmem:[%s3304_s0 + $0x90] sm:$0xff]  }
   0x3   :  { %1604 = vmatpush3.bf16.msra.mxu0 %v1676_v0  ;;  %1673 = vmatpush3.bf16.msra.mxu1 %v1676_v0  ;;  %v359_v6 = vand.u32 %v1677_v3, %v357_v4  ;;  %v1679_v7 = vld [vmem:[%s3304_s0 + $0x80] sm:$0xff]   ;;  %v1681_v9 = vld [vmem:[%s3304_s0 + $0x88] sm:$0xff]   ;;  %v1684_v12 = vld [vmem:[%s3304_s0 + $0x18] sm:$0xff]  }
   0x4   :  { %1607 = vmatprep.mubr.msk.bf16.mxu0 %vm257_vm2, %v1678_v5  ;;  %1639 = vmatprep.mubr.msk.bf16.mxu1 %vm257_vm2, %v1679_v7  ;;  %v1685_v13 = vld [vmem:[%s3304_s0 + $0x98] sm:$0xff]   ;;  %v1686_v14 = vld [vmem:[%s3304_s0 + $0x20] sm:$0xff]   ;;  %v1688_v16 = vld [vmem:[%s3304_s0 + $0x28] sm:$0xff]  }
   0x5   :  { %1605 = vmatprep.subr.bf16.mxu0 %v359_v6  ;;  %1672 = vmatprep.subr.bf16.mxu1 %v359_v6  ;;  %v1687_v15 = vld [vmem:[%s3304_s0 + $0xa0] sm:$0xff]   ;;  %v1689_v17 = vld [vmem:[%s3304_s0 + $0xa8] sm:$0xff]   ;;  %v1690_v18 = vld [vmem:[%s3304_s0 + $0x30] sm:$0xff]  }
   0x6   :  { %v1691_v19 = vld [vmem:[%s3304_s0 + $0xb0] sm:$0xff]   ;;  %v1692_v20 = vld [vmem:[%s3304_s0 + $0x38] sm:$0xff]   ;;  %v1694_v22 = vld [vmem:[%s3304_s0 + $0x40] sm:$0xff]  }
   0x7   :  { %1606 = vmatpush3.bf16.msra.mxu0 %v359_v6  ;;  %1674 = vmatpush3.bf16.msra.mxu1 %v359_v6  ;;  %v1693_v21 = vld [vmem:[%s3304_s0 + $0xb8] sm:$0xff]   ;;  %v1695_v23 = vld [vmem:[%s3304_s0 + $0xc0] sm:$0xff]   ;;  %v1696_v24 = vld [vmem:[%s3304_s0 + $0x48] sm:$0xff]  }
   0x8   :  { %v1697_v25 = vld [vmem:[%s3304_s0 + $0xc8] sm:$0xff]   ;;  %v1698_v26 = vld [vmem:[%s3304_s0 + $0x50] sm:$0xff]   ;;  %v1700_v28 = vld [vmem:[%s3304_s0 + $0x58] sm:$0xff]  }
   0x9   :  { %v1699_v27 = vld [vmem:[%s3304_s0 + $0xd0] sm:$0xff]   ;;  %v1701_v29 = vld [vmem:[%s3304_s0 + $0xd8] sm:$0xff]   ;;  %v1702_v30 = vld [vmem:[%s3304_s0 + $0x60] sm:$0xff]  }
   0xa   :  { %1608 = vmatmul.mubr.msk.bf16.vlgmr.msra.gmra.mrb[0].mxu0 %vm257_vm2, %v1680_v8  ;;  %1640 = vmatmul.mubr.msk.bf16.vlgmr.msra.gmra.mrb[0].mxu1 %vm257_vm2, %v1681_v9  ;;  %v1703_v31 = vld [vmem:[%s3304_s0 + $0xe0] sm:$0xff]   ;;  %v1704_v32 = vld [vmem:[%s3304_s0 + $0x68] sm:$0xff]   ;;  %v1706_v34 = vld [vmem:[%s3304_s0 + $0x70] sm:$0xff]  }
   0xb   :  { %1611 = vmatprep.mubr.msk.bf16.mxu0 %vm257_vm2, %v1682_v10  ;;  %1643 = vmatprep.mubr.msk.bf16.mxu1 %vm257_vm2, %v1683_v11  ;;  %v1705_v33 = vld [vmem:[%s3304_s0 + $0xe8] sm:$0xff]   ;;  %v1707_v35 = vld [vmem:[%s3304_s0 + $0xf0] sm:$0xff]   ;;  %v1708_v36 = vld [vmem:[%s3304_s0 + $0x78] sm:$0xff]  }
   0xc   :  { %v1709_v37 = vld [vmem:[%s3304_s0 + $0xf8] sm:$0xff]   ;;  %v2131_v38 = vld [vmem:[%s3305_s2] ss:$0 sm:$0xff] }
   0xd   :  { %v2136_v40 = vld [vmem:[%s3306_s3] ss:$0 sm:$0xff] }
  0x12   :  { %1612 = vmatmul.mubr.msk.bf16.gmra.mrb[4].mxu0 %vm257_vm2, %v1684_v12  ;;  %1644 = vmatmul.mubr.msk.bf16.gmra.mrb[4].mxu1 %vm257_vm2, %v1685_v13 }
  0x13   :  { %1615 = vmatprep.mubr.msk.bf16.mxu0 %vm257_vm2, %v1686_v14  ;;  %1647 = vmatprep.mubr.msk.bf16.mxu1 %vm257_vm2, %v1687_v15 }
  0x1a   :  { %1616 = vmatmul.mubr.msk.bf16.gmra.mrb[8].mxu0 %vm257_vm2, %v1688_v16  ;;  %1648 = vmatmul.mubr.msk.bf16.gmra.mrb[8].mxu1 %vm257_vm2, %v1689_v17 }
  0x1b   :  { %1619 = vmatprep.mubr.msk.bf16.mxu0 %vm257_vm2, %v1690_v18  ;;  %1651 = vmatprep.mubr.msk.bf16.mxu1 %vm257_vm2, %v1691_v19 }
  0x22   :  { %1620 = vmatmul.mubr.msk.bf16.gmra.mrb[12].mxu0 %vm257_vm2, %v1692_v20  ;;  %1652 = vmatmul.mubr.msk.bf16.gmra.mrb[12].mxu1 %vm257_vm2, %v1693_v21 }
  0x23   :  { %1623 = vmatprep.mubr.msk.bf16.mxu0 %vm257_vm2, %v1694_v22  ;;  %1655 = vmatprep.mubr.msk.bf16.mxu1 %vm257_vm2, %v1695_v23 }
  0x2a   :  { %1624 = vmatmul.mubr.msk.bf16.gmra.mrb[16].mxu0 %vm257_vm2, %v1696_v24  ;;  %1656 = vmatmul.mubr.msk.bf16.gmra.mrb[16].mxu1 %vm257_vm2, %v1697_v25 }
  0x2b   :  { %1627 = vmatprep.mubr.msk.bf16.mxu0 %vm257_vm2, %v1698_v26  ;;  %1659 = vmatprep.mubr.msk.bf16.mxu1 %vm257_vm2, %v1699_v27 }
  0x32   :  { %1628 = vmatmul.mubr.msk.bf16.gmra.mrb[20].mxu0 %vm257_vm2, %v1700_v28  ;;  %1660 = vmatmul.mubr.msk.bf16.gmra.mrb[20].mxu1 %vm257_vm2, %v1701_v29 }
  0x33   :  { %1631 = vmatprep.mubr.msk.bf16.mxu0 %vm257_vm2, %v1702_v30  ;;  %1663 = vmatprep.mubr.msk.bf16.mxu1 %vm257_vm2, %v1703_v31 }
  0x3a   :  { %1632 = vmatmul.mubr.msk.bf16.gmra.mrb[24].mxu0 %vm257_vm2, %v1704_v32  ;;  %1664 = vmatmul.mubr.msk.bf16.gmra.mrb[24].mxu1 %vm257_vm2, %v1705_v33 }
  0x3b   :  { %1635 = vmatprep.mubr.msk.bf16.mxu0 %vm257_vm2, %v1706_v34  ;;  %1667 = vmatprep.mubr.msk.bf16.mxu1 %vm257_vm2, %v1707_v35 }
  0x42   :  { %1636 = vmatmul.mubr.msk.bf16.gmra.mrb[28].mxu0 %vm257_vm2, %v1708_v36  ;;  %1668 = vmatmul.mubr.msk.bf16.gmra.mrb[28].mxu1 %vm257_vm2, %v1709_v37 }
  0xdd   :  { %v1609_v39 = vpop.f32.mrb[0].mxu0  ;;  %v1641_v41 = vpop.f32.mrb[0].mxu1 }
  0xde   :  { %v659_v42 = vmul.f32 %v1609_v39, %v2131_v38  ;;  %v691_v43 = vmul.f32 %v1641_v41, %v2131_v38  ;;  %v395_v44 = vpop.f32.mrb[1].mxu0  ;;  %v523_v45 = vpop.f32.mrb[1].mxu1 }
  0xdf   :  { %v657_v46 = vmul.f32 %v2131_v38, %v395_v44  ;;  %v689_v47 = vmul.f32 %v2131_v38, %v523_v45  ;;  %v1610_v48 = vpop.f32.mrb[2].mxu0  ;;  %v1642_v49 = vpop.f32.mrb[2].mxu1 }
  0xe0   :  { %v2143_v50 = vadd.f32 %v2136_v40, %v659_v42  ;;  %v2146_v51 = vadd.f32 %v2136_v40, %v691_v43  ;;  %v660_v52 = vmul.f32 %v1610_v48, %v2131_v38  ;;  %v692_v53 = vmul.f32 %v1642_v49, %v2131_v38  ;;  %v398_v54 = vpop.f32.mrb[3].mxu0  ;;  %v526_v55 = vpop.f32.mrb[3].mxu1 }
  0xe1   :  { %v2151_v56 = vadd.f32 %v2136_v40, %v657_v46  ;;  %v2154_v57 = vadd.f32 %v2136_v40, %v689_v47  ;;  %v658_v58 = vmul.f32 %v2131_v38, %v398_v54  ;;  %v690_v59 = vmul.f32 %v2131_v38, %v526_v55 }
  0xe2   :  { %v794_v60 = vand.u32 2147483647, %v2143_v50  ;;  %v826_v61 = vand.u32 2147483647, %v2146_v51  ;;  %v2163_v2 = vadd.f32 %v2136_v40, %v660_v52  ;;  %v2166_v3 = vadd.f32 %v2136_v40, %v692_v53 }
  0xe3   :  { %v792_v62 = vand.u32 2147483647, %v2151_v56  ;;  %v824_v63 = vand.u32 2147483647, %v2154_v57  ;;  %v2169_v6 = vadd.f32 %v2136_v40, %v658_v58  ;;  %v2172_v7 = vadd.f32 %v2136_v40, %v690_v59 }
  0xe4   :  { %v858_v0 = vsub.f32 0.0, %v794_v60  ;;  %v890_v1 = vsub.f32 0.0, %v826_v61  ;;  %v795_v12 = vand.u32 2147483647, %v2163_v2  ;;  %v827_v17 = vand.u32 2147483647, %v2166_v3 }
  0xe5   :  { %v856_v4 = vsub.f32 0.0, %v792_v62  ;;  %v888_v5 = vsub.f32 0.0, %v824_v63  ;;  %v1613_v8 = vpop.f32.mrb[4].mxu0  ;;  %v1645_v9 = vpop.f32.mrb[4].mxu1  ;;  %v793_v18 = vand.u32 2147483647, %v2169_v6 }
  0xe6   :  { %v924_v10 = vmul.f32 1.442695, %v858_v0  ;;  %v988_v11 = vmul.f32 1.442695, %v890_v1  ;;  %v663_v15 = vmul.f32 %v1613_v8, %v2131_v38  ;;  %v859_v16 = vsub.f32 0.0, %v795_v12  ;;  %v411_v19 = vpop.f32.mrb[5].mxu0 }
  0xe7   :  { %v920_v13 = vmul.f32 1.442695, %v856_v4  ;;  %v984_v14 = vmul.f32 1.442695, %v888_v5  ;;  %v825_v20 = vand.u32 2147483647, %v2172_v7  ;;  %v695_v30 = vmul.f32 %v1645_v9, %v2131_v38 }
  0xe8   :  { %1710 = vpow2.f32 %v924_v10  ;;  %v539_v21 = vpop.f32.mrb[5].mxu1  ;;  %v1614_v22 = vpop.f32.mrb[6].mxu0  ;;  %v926_v23 = vmul.f32 1.442695, %v859_v16  ;;  %v891_v24 = vsub.f32 0.0, %v827_v17  ;;  %v857_v25 = vsub.f32 0.0, %v793_v18 }
  0xe9   :  { %1712 = vpow2.f32 %v988_v11  ;;  %v1646_v26 = vpop.f32.mrb[6].mxu1  ;;  %v414_v27 = vpop.f32.mrb[7].mxu0  ;;  %v889_v28 = vsub.f32 0.0, %v825_v20  ;;  %v2180_v29 = vadd.f32 %v2136_v40, %v663_v15  ;;  %v661_v34 = vmul.f32 %v2131_v38, %v411_v19 }
  0xea   :  { %1714 = vpow2.f32 %v920_v13  ;;  %v2183_v31 = vpop.f32.mrb[7].mxu1  ;;  %v990_v32 = vmul.f32 1.442695, %v891_v24  ;;  %v922_v33 = vmul.f32 1.442695, %v857_v25  ;;  %v2188_v37 = vadd.f32 %v2136_v40, %v695_v30 }
  0xeb   :  { %1716 = vpow2.f32 %v984_v14  ;;  %v986_v35 = vmul.f32 1.442695, %v889_v28  ;;  %v798_v36 = vand.u32 2147483647, %v2180_v29  ;;  %v2193_v41 = vadd.f32 %v2136_v40, %v661_v34 }
  0xec   :  { %1718 = vpow2.f32 %v926_v23  ;;  %v693_v42 = vmul.f32 %v2131_v38, %v539_v21  ;;  %v664_v43 = vmul.f32 %v1614_v22, %v2131_v38  ;;  %v830_v47 = vand.u32 2147483647, %v2188_v37 }
  0xed   :  { %v2190_v39 = vpop.f32.mrb[8].mxu0  ;;  %1720 = vpow2.f32 %v990_v32  ;;  %v2197_v44 = vpop.f32.mrb[8].mxu1  ;;  %v862_v46 = vsub.f32 0.0, %v798_v36  ;;  %v796_v52 = vand.u32 2147483647, %v2193_v41  ;;  %v696_v61 = vmul.f32 %v1646_v26, %v2131_v38 }
  0xee   :  { %v2199_v45 = vpop.f32.mrb[9].mxu0  ;;  %1722 = vpow2.f32 %v922_v33  ;;  %v2202_v48 = vpop.f32.mrb[9].mxu1  ;;  %v2208_v53 = vadd.f32 %v2136_v40, %v693_v42  ;;  %v894_v59 = vsub.f32 0.0, %v830_v47  ;;  %v2215_v60 = vadd.f32 %v2136_v40, %v664_v43 }
  0xef   :  { %v2204_v49 = vpop.f32.mrb[10].mxu0  ;;  %1724 = vpow2.f32 %v986_v35  ;;  %v2210_v54 = vpop.f32.mrb[10].mxu1  ;;  %v932_v58 = vmul.f32 1.442695, %v862_v46  ;;  %v662_v1 = vmul.f32 %v2131_v38, %v414_v27  ;;  %v860_v8 = vsub.f32 0.0, %v796_v52 }
  0xf0   :  { %v2212_v55 = vpop.f32.mrb[11].mxu0  ;;  %v2218_v62 = vpop.f32.mrb[11].mxu1  ;;  %v828_v0 = vand.u32 2147483647, %v2208_v53  ;;  %v799_v11 = vand.u32 2147483647, %v2215_v60  ;;  %v2235_v15 = vadd.f32 %v2136_v40, %v696_v61  ;;  %v694_v43 = vmul.f32 %v2131_v38, %v2183_v31 }
  0xf1   :  { %1726 = vpow2.f32 %v932_v58  ;;  %v996_v14 = vmul.f32 1.442695, %v894_v59  ;;  %v2245_v21 = vadd.f32 %v2136_v40, %v662_v1  ;;  %v928_v25 = vmul.f32 1.442695, %v860_v8 }
  0xf2   :  { %v2220_v63 = vpop.eup %1710  ;;  %v892_v20 = vsub.f32 0.0, %v828_v0  ;;  %v831_v26 = vand.u32 2147483647, %v2235_v15  ;;  %v863_v30 = vsub.f32 0.0, %v799_v11  ;;  %vm1178_vm3 = vcmp.ge.f32.partialorder %v2143_v50, 0.0 }
  0xf3   :  { %v2224_v4 = vpop.eup %1712  ;;  %v1050_v5 = vadd.f32 1.0, %v2220_v63  ;;  %v797_v32 = vand.u32 2147483647, %v2245_v21  ;;  %vm1210_vm5 = vcmp.ge.f32.partialorder %v2146_v51, 0.0  ;;  %v667_v59 = vmul.f32 %v2190_v39, %v2131_v38 }
  0xf4   :  { %v2227_v9 = vpop.eup %1714  ;;  %v1082_v10 = vadd.f32 1.0, %v2224_v4  ;;  %v895_v42 = vsub.f32 0.0, %v831_v26  ;;  %v992_v58 = vmul.f32 1.442695, %v892_v20  ;;  %vm1176_vm6 = vcmp.ge.f32.partialorder %v2151_v56, 0.0 }
  0xf5   :  { %v2231_v12 = vpop.eup %1716  ;;  %1728 = vrcp.f32 %v1050_v5  ;;  %v1048_v13 = vadd.f32 1.0, %v2227_v9  ;;  %v2237_v16 = vpop.f32.mrb[12].mxu0  ;;  %v861_v31 = vsub.f32 0.0, %v797_v32  ;;  %v2279_v0 = vadd.f32 %v2136_v40, %v694_v43 }
  0xf6   :  { %v2239_v17 = vpop.f32.mrb[12].mxu1  ;;  %v2241_v18 = vpop.eup %1718  ;;  %1730 = vrcp.f32 %v1082_v10  ;;  %v1080_v19 = vadd.f32 1.0, %v2231_v12  ;;  %vm1208_vm7 = vcmp.ge.f32.partialorder %v2154_v57, 0.0  ;;  %v934_v1 = vmul.f32 1.442695, %v863_v30 }
  0xf7   :  { %v2247_v22 = vpop.f32.mrb[13].mxu0  ;;  %v2249_v23 = vpop.f32.mrb[13].mxu1  ;;  %1732 = vrcp.f32 %v1048_v13  ;;  %v1051_v24 = vadd.f32 1.0, %v2241_v18  ;;  %v2283_v5 = vadd.f32 %v2136_v40, %v667_v59  ;;  %v699_v8 = vmul.f32 %v2197_v44, %v2131_v38 }
  0xf8   :  { %v2253_v27 = vpop.f32.mrb[14].mxu0  ;;  %v2255_v28 = vpop.eup %1720  ;;  %1734 = vrcp.f32 %v1080_v19  ;;  %v998_v10 = vmul.f32 1.442695, %v895_v42  ;;  %v829_v11 = vand.u32 2147483647, %v2279_v0  ;;  %v665_v13 = vmul.f32 %v2131_v38, %v2199_v45 }
  0xf9   :  { %v2258_v33 = vpop.f32.mrb[14].mxu1  ;;  %v2260_v34 = vpop.f32.mrb[15].mxu0  ;;  %1736 = vrcp.f32 %v1051_v24  ;;  %v1083_v36 = vadd.f32 1.0, %v2255_v28  ;;  %vm1179_vm8 = vcmp.ge.f32.partialorder %v2163_v2, 0.0  ;;  %v802_v44 = vand.u32 2147483647, %v2283_v5 }
  0xfa   :  { %v2262_v35 = vpop.eup %1722  ;;  %v2268_v46 = vpop.f32.mrb[15].mxu1  ;;  %1738 = vpow2.f32 %v996_v14  ;;  %vm1211_vm9 = vcmp.ge.f32.partialorder %v2166_v3, 0.0  ;;  %v930_v45 = vmul.f32 1.442695, %v861_v31  ;;  %v893_v32 = vsub.f32 0.0, %v829_v11 }
  0xfb   :  { %v2270_v47 = vpop.eup %1724  ;;  %v1049_v52 = vadd.f32 1.0, %v2262_v35  ;;  %1740 = vrcp.f32 %v1083_v36  ;;  %v2305_v36 = vadd.f32 %v2136_v40, %v699_v8  ;;  %vm1177_vm10 = vcmp.ge.f32.partialorder %v2169_v6, 0.0 }
  0xfc   :  { %v1081_v61 = vadd.f32 1.0, %v2270_v47  ;;  %v2287_v39 = vpop.eup %1726  ;;  %v866_v59 = vsub.f32 0.0, %v802_v44  ;;  %vm1209_vm11 = vcmp.ge.f32.partialorder %v2172_v7, 0.0  ;;  %vm1182_vm12 = vcmp.ge.f32.partialorder %v2180_v29, 0.0 }
  0xfd   :  { %1742 = vrcp.f32 %v1049_v52  ;;  %v2292_v14 = vpop.f32.mrb[16].mxu0  ;;  %v2294_v19 = vpop.f32.mrb[16].mxu1  ;;  %v1054_v20 = vadd.f32 1.0, %v2287_v39  ;;  %vm1214_vm13 = vcmp.ge.f32.partialorder %v2188_v37, 0.0  ;;  %vm1180_vm14 = vcmp.ge.f32.partialorder %v2193_v41, 0.0 }
  0xfe   :  { %1744 = vrcp.f32 %v1081_v61  ;;  %v2299_v24 = vpop.f32.mrb[17].mxu0  ;;  %v2301_v26 = vpop.f32.mrb[17].mxu1  ;;  %v2314_v61 = vadd.f32 %v2136_v40, %v665_v13  ;;  %v940_v44 = vmul.f32 1.442695, %v866_v59  ;;  %vm1212_vm15 = vcmp.ge.f32.partialorder %v2208_v53, 0.0 }
  0xff   :  { %1746 = vpow2.f32 %v928_v25  ;;  %3308 = vst [vmem:[#allocation2_spill] sm:$0xff] %v2301_v26  ;;  %v1729_v30 = vpop.eup %1728  ;;  %v2307_v42 = vpop.f32.mrb[18].mxu0  ;;  %vm1183_vm0 = vcmp.ge.f32.partialorder %v2215_v60, 0.0  ;;  %vm1215_vm1 = vcmp.ge.f32.partialorder %v2235_v15, 0.0  ;;  %vm1181_vm2 = vcmp.ge.f32.partialorder %v2245_v21, 0.0 }
 0x100   :  { %1748 = vpow2.f32 %v992_v58  ;;  %3309 = vst [vmem:[#allocation3_spill] sm:$0xff] %v2307_v42  ;;  %v2309_v43 = vpop.f32.mrb[18].mxu1  ;;  %v1731_v25 = vpop.eup %1730  ;;  %v1242_v52 = vmul.f32 %v1729_v30, %v2220_v63  ;;  %v834_v63 = vand.u32 2147483647, %v2305_v36 }
 0x101   :  { %3310 = vst [vmem:[#allocation4_spill] sm:$0xff] %v2309_v43  ;;  %1750 = vrcp.f32 %v1054_v20  ;;  %v2316_v58 = vpop.f32.mrb[19].mxu0  ;;  %v2318_v31 = vpop.f32.mrb[19].mxu1  ;;  %v1274_v11 = vmul.f32 %v1731_v25, %v2224_v4  ;;  %v994_v43 = vmul.f32 1.442695, %v893_v32 }
 0x102   :  { %3311 = vst [vmem:[#allocation5_spill] sm:$0xff] %v2316_v58  ;;  %3312 = vst [vmem:[#allocation6_spill] sm:$0xff] %v2318_v31  ;;  %v1733_v8 = vpop.eup %1732  ;;  %1752 = vpow2.f32 %v934_v1  ;;  %v1306_v20 = vsel %vm1178_vm3, %v1729_v30, %v1242_v52  ;;  %vm1213_vm3 = vcmp.ge.f32.partialorder %v2279_v0, 0.0 }
 0x103   :  { %v1735_v42 = vpop.eup %1734  ;;  %v1240_v13 = vmul.f32 %v1733_v8, %v2227_v9  ;;  %1754 = vpow2.f32 %v998_v10  ;;  %v1370_v31 = vmul.f32 %v1306_v20, %v2143_v50  ;;  %v1338_v4 = vsel %vm1210_vm5, %v1731_v25, %v1274_v11 }
 0x104   :  { %v1737_v58 = vpop.eup %1736  ;;  %v1272_v26 = vmul.f32 %v1735_v42, %v2231_v12  ;;  %1756 = vpow2.f32 %v930_v45  ;;  %v1402_v32 = vmul.f32 %v1338_v4, %v2146_v51  ;;  %vm1186_vm5 = vcmp.ge.f32.partialorder %v2283_v5, 0.0 }
 0x105   :  { %v2330_v1 = vpop.eup %1738  ;;  %v1304_v30 = vsel %vm1176_vm6, %v1733_v8, %v1240_v13  ;;  %v1243_v9 = vmul.f32 %v1737_v58, %v2241_v18  ;;  %1758 = vpow2.f32 %v994_v43  ;;  %1435 = vst.msk [vmem:[%s3307_s4 + $0x10] sm:$0xff] %vm1432_vm4, %v1370_v31  ;;  %v2344_v51 = vpop.f32.mrb[20].mxu0  ;;  %v800_v13 = vand.u32 2147483647, %v2314_v61 }
 0x106   :  { %v1741_v10 = vpop.eup %1740  ;;  %v1368_v50 = vmul.f32 %v1304_v30, %v2151_v56  ;;  %v1336_v12 = vsel %vm1208_vm7, %v1735_v42, %v1272_v26  ;;  %v1086_v45 = vadd.f32 1.0, %v2330_v1  ;;  %1760 = vpow2.f32 %v940_v44  ;;  %v2346_v25 = vpop.f32.mrb[20].mxu1  ;;  %1467 = vst.msk [vmem:[%s3307_s4 + $0x110] sm:$0xff] %vm1432_vm4, %v1402_v32 }
 0x107   :  { %v1743_v18 = vpop.eup %1742  ;;  %v1400_v43 = vmul.f32 %v1336_v12, %v2154_v57  ;;  %v1307_v56 = vsel %vm1179_vm8, %v1737_v58, %v1243_v9  ;;  %v1275_v26 = vmul.f32 %v1741_v10, %v2255_v28  ;;  %v898_v42 = vsub.f32 0.0, %v834_v63  ;;  %v2356_v52 = vpop.f32.mrb[21].mxu0 }
 0x108   :  { %v2358_v59 = vpop.f32.mrb[21].mxu1  ;;  %v1745_v31 = vpop.eup %1744  ;;  %1433 = vst.msk [vmem:[%s3307_s4] sm:$0xff] %vm1432_vm4, %v1368_v50  ;;  %v1371_v8 = vmul.f32 %v1307_v56, %v2163_v2  ;;  %v1241_v57 = vmul.f32 %v1743_v18, %v2262_v35  ;;  %1762 = vrcp.f32 %v1086_v45  ;;  %v697_v58 = vmul.f32 %v2131_v38, %v2202_v48 }
 0x109   :  { %v2368_v28 = vpop.f32.mrb[22].mxu0  ;;  %v2370_v11 = vpop.f32.mrb[22].mxu1  ;;  %1465 = vst.msk [vmem:[%s3307_s4 + $0x100] sm:$0xff] %vm1432_vm4, %v1400_v43  ;;  %v1339_v2 = vsel %vm1211_vm9, %v1741_v10, %v1275_v26  ;;  %v1273_v35 = vmul.f32 %v1745_v31, %v2270_v47  ;;  %v1004_v20 = vmul.f32 1.442695, %v898_v42  ;;  %v864_v43 = vsub.f32 0.0, %v800_v13 }
 0x10a   :  { %v2372_v63 = vpop.eup %1746  ;;  %v2382_v48 = vpop.f32.mrb[23].mxu0  ;;  %1436 = vst.msk [vmem:[%s3307_s4 + $0x18] sm:$0xff] %vm1432_vm4, %v1371_v8  ;;  %v1403_v32 = vmul.f32 %v1339_v2, %v2166_v3  ;;  %v1305_v30 = vsel %vm1177_vm10, %v1743_v18, %v1241_v57  ;;  %v2417_v26 = vadd.f32 %v2136_v40, %v697_v58  ;;  %v700_v8 = vmul.f32 %v2210_v54, %v2131_v38 }
 0x10b   :  { %v2384_v44 = vpop.f32.mrb[23].mxu1  ;;  %v2386_v4 = vpop.eup %1748  ;;  %v1052_v47 = vadd.f32 1.0, %v2372_v63  ;;  %v1369_v10 = vmul.f32 %v1305_v30, %v2169_v6  ;;  %v1337_v50 = vsel %vm1209_vm11, %v1745_v31, %v1273_v35  ;;  %1764 = vpow2.f32 %v1004_v20 }
 0x10c   :  { %v1751_v9 = vpop.eup %1750  ;;  %v1084_v12 = vadd.f32 1.0, %v2386_v4  ;;  %1468 = vst.msk [vmem:[%s3307_s4 + $0x118] sm:$0xff] %vm1432_vm4, %v1403_v32  ;;  %v1401_v3 = vmul.f32 %v1337_v50, %v2172_v7  ;;  %v668_v7 = vmul.f32 %v2204_v49, %v2131_v38  ;;  %v832_v20 = vand.u32 2147483647, %v2417_v26 }
 0x10d   :  { %v2401_v45 = vpop.eup %1752  ;;  %v1246_v18 = vmul.f32 %v1751_v9, %v2287_v39  ;;  %1766 = vrcp.f32 %v1052_v47  ;;  %1434 = vst.msk [vmem:[%s3307_s4 + $0x8] sm:$0xff] %vm1432_vm4, %v1369_v10  ;;  %v2433_v57 = vpop.f32.mrb[24].mxu0  ;;  %v936_v47 = vmul.f32 1.442695, %v864_v43  ;;  %vm1218_vm6 = vcmp.ge.f32.partialorder %v2305_v36, 0.0 }
 0x10e   :  { %v2409_v6 = vpop.eup %1754  ;;  %1768 = vrcp.f32 %v1084_v12  ;;  %v1055_v56 = vadd.f32 1.0, %v2401_v45  ;;  %1466 = vst.msk [vmem:[%s3307_s4 + $0x108] sm:$0xff] %vm1432_vm4, %v1401_v3  ;;  %v2435_v49 = vpop.f32.mrb[24].mxu1  ;;  %v896_v12 = vsub.f32 0.0, %v832_v20  ;;  %v2463_v3 = vadd.f32 %v2136_v40, %v700_v8 }
 0x10f   :  { %v2421_v42 = vpop.eup %1756  ;;  %v1310_v39 = vsel %vm1182_vm12, %v1751_v9, %v1246_v18  ;;  %v1087_v31 = vadd.f32 1.0, %v2409_v6  ;;  %v2442_v13 = vpop.f32.mrb[25].mxu0  ;;  %v2451_v9 = vadd.f32 %v2136_v40, %v668_v7  ;;  %vm1184_vm7 = vcmp.ge.f32.partialorder %v2314_v61, 0.0 }
 0x110   :  { %v2437_v58 = vpop.eup %1758  ;;  %v1374_v2 = vmul.f32 %v1310_v39, %v2180_v29  ;;  %1770 = vrcp.f32 %v1055_v56  ;;  %v1053_v35 = vadd.f32 1.0, %v2421_v42  ;;  %v2444_v32 = vpop.f32.mrb[25].mxu1  ;;  %v666_v39 = vmul.f32 %v2131_v38, %v2212_v55 }
 0x111   :  { %v2446_v30 = vpop.eup %1760  ;;  %1772 = vrcp.f32 %v1087_v31  ;;  %v1085_v54 = vadd.f32 1.0, %v2437_v58  ;;  %v2453_v29 = vpop.f32.mrb[26].mxu0  ;;  %v803_v7 = vand.u32 2147483647, %v2451_v9  ;;  %v1000_v8 = vmul.f32 1.442695, %v896_v12 }
 0x112   :  { %3313 = vst [vmem:[#allocation7_spill] sm:$0xff] %v2453_v29  ;;  %v2455_v10 = vpop.f32.mrb[26].mxu1  ;;  %1439 = vst.msk [vmem:[%s3307_s4 + $0x30] sm:$0xff] %vm1432_vm4, %v1374_v2  ;;  %1774 = vrcp.f32 %v1053_v35  ;;  %v1058_v50 = vadd.f32 1.0, %v2446_v30  ;;  %v2465_v18 = vpop.f32.mrb[27].mxu0  ;;  %v2478_v20 = vadd.f32 %v2136_v40, %v666_v39  ;;  %vm1216_vm8 = vcmp.ge.f32.partialorder %v2417_v26, 0.0 }
 0x113   :  { %3314 = vst [vmem:[#allocation8_spill] sm:$0xff] %v2455_v10  ;;  %3315 = vst [vmem:[#allocation9_spill] sm:$0xff] %v2465_v18  ;;  %v2467_v43 = vpop.f32.mrb[27].mxu1  ;;  %v1763_v56 = vpop.eup %1762  ;;  %1776 = vrcp.f32 %v1085_v54  ;;  %v835_v2 = vand.u32 2147483647, %v2463_v3  ;;  %v867_v35 = vsub.f32 0.0, %v803_v7 }
 0x114   :  { %3316 = vst [vmem:[#allocation10_spill] sm:$0xff] %v2467_v43  ;;  %v1278_v31 = vmul.f32 %v1763_v56, %v2330_v1  ;;  %1778 = vrcp.f32 %v1058_v50  ;;  %v698_v50 = vmul.f32 %v2131_v38, %v2218_v62  ;;  %v801_v39 = vand.u32 2147483647, %v2478_v20 }
 0x115   :  { %1780 = vpow2.f32 %v936_v47  ;;  %v2480_v54 = vpop.eup %1764  ;;  %v899_v1 = vsub.f32 0.0, %v835_v2  ;;  %v942_v7 = vmul.f32 1.442695, %v867_v35  ;;  %v2490_v18 = vpop.f32.mrb[28].mxu0  ;;  %vm1187_vm9 = vcmp.ge.f32.partialorder %v2451_v9, 0.0 }
 0x116   :  { %v1342_v55 = vsel %vm1214_vm13, %v1763_v56, %v1278_v31  ;;  %1782 = vpow2.f32 %v1000_v8  ;;  %v1090_v47 = vadd.f32 1.0, %v2480_v54  ;;  %3317 = vst [vmem:[#allocation11_spill] sm:$0xff] %v2490_v18  ;;  %v2495_v8 = vadd.f32 %v2136_v40, %v698_v50  ;;  %v2497_v62 = vpop.f32.mrb[28].mxu1  ;;  %v2499_v2 = vpop.f32.mrb[29].mxu0 }
 0x117   :  { %v1767_v12 = vpop.eup %1766  ;;  %v1406_v43 = vmul.f32 %v1342_v55, %v2188_v37  ;;  %v1006_v31 = vmul.f32 1.442695, %v899_v1  ;;  %3318 = vst [vmem:[#allocation12_spill] sm:$0xff] %v2497_v62  ;;  %3319 = vst [vmem:[#allocation13_spill] sm:$0xff] %v2499_v2  ;;  %v865_v35 = vsub.f32 0.0, %v801_v39  ;;  %v2508_v55 = vpop.f32.mrb[29].mxu1 }
 0x118   :  { %v1769_v10 = vpop.eup %1768  ;;  %v1244_v56 = vmul.f32 %v1767_v12, %v2372_v63  ;;  %1784 = vrcp.f32 %v1090_v47  ;;  %v671_v63 = vmul.f32 %v2237_v16, %v2131_v38  ;;  %3320 = vst [vmem:[#allocation14_spill] sm:$0xff] %v2508_v55  ;;  %v2510_v1 = vpop.f32.mrb[30].mxu0  ;;  %vm1219_vm10 = vcmp.ge.f32.partialorder %v2463_v3, 0.0 }
 0x119   :  { %1471 = vst.msk [vmem:[%s3307_s4 + $0x130] sm:$0xff] %vm1432_vm4, %v1406_v43  ;;  %v1276_v37 = vmul.f32 %v1769_v10, %v2386_v4  ;;  %3321 = vst [vmem:[#allocation15_spill] sm:$0xff] %v2510_v1  ;;  %1786 = vpow2.f32 %v942_v7  ;;  %v833_v43 = vand.u32 2147483647, %v2495_v8  ;;  %v2516_v62 = vpop.f32.mrb[30].mxu1  ;;  %v2518_v4 = vpop.f32.mrb[31].mxu0 }
 0x11a   :  { %v1771_v50 = vpop.eup %1770  ;;  %v1308_v2 = vsel %vm1180_vm14, %v1767_v12, %v1244_v56  ;;  %3322 = vst [vmem:[#allocation16_spill] sm:$0xff] %v2516_v62  ;;  %1788 = vpow2.f32 %v1006_v31  ;;  %v2524_v55 = vpop.f32.mrb[31].mxu1  ;;  %v938_v18 = vmul.f32 1.442695, %v865_v35  ;;  %vm1185_vm11 = vcmp.ge.f32.partialorder %v2478_v20, 0.0 }
 0x11b   :  { %v1773_v47 = vpop.eup %1772  ;;  %v1372_v16 = vmul.f32 %v1308_v2, %v2193_v41  ;;  %v1340_v39 = vsel %vm1212_vm15, %v1769_v10, %v1276_v37  ;;  %v1247_v1 = vmul.f32 %v1771_v50, %v2401_v45  ;;  %v897_v62 = vsub.f32 0.0, %v833_v43 }
 0x11c   :  { %v1775_v12 = vpop.eup %1774  ;;  %v1404_v7 = vmul.f32 %v1340_v39, %v2208_v53  ;;  %v1279_v56 = vmul.f32 %v1773_v47, %v2409_v6  ;;  %v2536_v10 = vadd.f32 %v2136_v40, %v671_v63  ;;  %v703_v53 = vmul.f32 %v2239_v17, %v2131_v38 }
 0x11d   :  { %v1777_v29 = vpop.eup %1776  ;;  %1437 = vst.msk [vmem:[%s3307_s4 + $0x20] sm:$0xff] %vm1432_vm4, %v1372_v16  ;;  %v1311_v41 = vsel %vm1183_vm0, %v1771_v50, %v1247_v1  ;;  %v1245_v45 = vmul.f32 %v1775_v12, %v2421_v42  ;;  %1790 = vpow2.f32 %v938_v18  ;;  %v1002_v1 = vmul.f32 1.442695, %v897_v62 }
 0x11e   :  { %v1779_v6 = vpop.eup %1778  ;;  %1469 = vst.msk [vmem:[%s3307_s4 + $0x120] sm:$0xff] %vm1432_vm4, %v1404_v7  ;;  %v1375_v31 = vmul.f32 %v1311_v41, %v2215_v60  ;;  %v1343_v2 = vsel %vm1215_vm1, %v1773_v47, %v1279_v56  ;;  %v1277_v37 = vmul.f32 %v1777_v29, %v2437_v58  ;;  %v806_v18 = vand.u32 2147483647, %v2536_v10 }
 0x11f   :  { %v2548_v42 = vpop.eup %1780  ;;  %v1407_v35 = vmul.f32 %v1343_v2, %v2235_v15  ;;  %v1309_v17 = vsel %vm1181_vm2, %v1775_v12, %v1245_v45  ;;  %v1250_v63 = vmul.f32 %v1779_v6, %v2446_v30  ;;  %1792 = vpow2.f32 %v1002_v1 }
 0x120   :  { %v2554_v50 = vpop.eup %1782  ;;  %1440 = vst.msk [vmem:[%s3307_s4 + $0x38] sm:$0xff] %vm1432_vm4, %v1375_v31  ;;  %v1373_v60 = vmul.f32 %v1309_v17, %v2245_v21  ;;  %v1341_v58 = vsel %vm1213_vm3, %v1777_v29, %v1277_v37  ;;  %v1056_v15 = vadd.f32 1.0, %v2548_v42  ;;  %v870_v29 = vsub.f32 0.0, %v806_v18 }
 0x121   :  { %1472 = vst.msk [vmem:[%s3307_s4 + $0x138] sm:$0xff] %vm1432_vm4, %v1407_v35  ;;  %v1405_v30 = vmul.f32 %v1341_v58, %v2279_v0  ;;  %v1314_v62 = vsel %vm1186_vm5, %v1779_v6, %v1250_v63  ;;  %v1088_v43 = vadd.f32 1.0, %v2554_v50  ;;  %v2583_v0 = vadd.f32 %v2136_v40, %v703_v53 }
 0x122   :  { %1438 = vst.msk [vmem:[%s3307_s4 + $0x28] sm:$0xff] %vm1432_vm4, %v1373_v60  ;;  %v1378_v21 = vmul.f32 %v1314_v62, %v2283_v5  ;;  %1794 = vrcp.f32 %v1056_v15  ;;  %v1785_v47 = vpop.eup %1784  ;;  %v669_v16 = vmul.f32 %v2131_v38, %v2247_v22  ;;  %v701_v39 = vmul.f32 %v2131_v38, %v2249_v23 }
 0x123   :  { %1470 = vst.msk [vmem:[%s3307_s4 + $0x128] sm:$0xff] %vm1432_vm4, %v1405_v30  ;;  %1796 = vrcp.f32 %v1088_v43  ;;  %v2589_v12 = vpop.eup %1786  ;;  %v1282_v5 = vmul.f32 %v1785_v47, %v2480_v54  ;;  %v948_v7 = vmul.f32 1.442695, %v870_v29  ;;  %v672_v56 = vmul.f32 %v2253_v27, %v2131_v38 }
 0x124   :  { %1443 = vst.msk [vmem:[%s3307_s4 + $0x50] sm:$0xff] %vm1432_vm4, %v1378_v21  ;;  %v2599_v41 = vpop.eup %1788  ;;  %v1059_v22 = vadd.f32 1.0, %v2589_v12  ;;  %v838_v23 = vand.u32 2147483647, %v2583_v0  ;;  %v2604_v45 = vadd.f32 %v2136_v40, %v669_v16  ;;  %v704_v53 = vmul.f32 %v2258_v33, %v2131_v38 }
 0x125   :  { %v1346_v6 = vsel %vm1218_vm6, %v1785_v47, %v1282_v5  ;;  %v1091_v31 = vadd.f32 1.0, %v2599_v41  ;;  %1798 = vpow2.f32 %v948_v7  ;;  %v2610_v54 = vadd.f32 %v2136_v40, %v701_v39 }
 0x126   :  { %v1410_v27 = vmul.f32 %v1346_v6, %v2305_v36  ;;  %1800 = vrcp.f32 %v1059_v22  ;;  %v902_v2 = vsub.f32 0.0, %v838_v23  ;;  %v804_v37 = vand.u32 2147483647, %v2604_v45 }
 0x127   :  { %v2614_v35 = vpop.eup %1790  ;;  %1802 = vrcp.f32 %v1091_v31  ;;  %v836_v17 = vand.u32 2147483647, %v2610_v54  ;;  %v2623_v36 = vadd.f32 %v2136_v40, %v672_v56  ;;  %v2627_v58 = vadd.f32 %v2136_v40, %v704_v53 }
 0x128   :  { %1475 = vst.msk [vmem:[%s3307_s4 + $0x150] sm:$0xff] %vm1432_vm4, %v1410_v27  ;;  %v1057_v33 = vadd.f32 1.0, %v2614_v35  ;;  %v1012_v63 = vmul.f32 1.442695, %v902_v2  ;;  %v868_v1 = vsub.f32 0.0, %v804_v37  ;;  %v670_v15 = vmul.f32 %v2131_v38, %v2260_v34 }
 0x129   :  { %v900_v60 = vsub.f32 0.0, %v836_v17  ;;  %v2631_v18 = vpop.eup %1792  ;;  %v807_v62 = vand.u32 2147483647, %v2623_v36  ;;  %v702_v43 = vmul.f32 %v2131_v38, %v2268_v46  ;;  %v839_v16 = vand.u32 2147483647, %v2627_v58 }
 0x12a   :  { %1804 = vrcp.f32 %v1057_v33  ;;  %v944_v30 = vmul.f32 1.442695, %v868_v1  ;;  %v1089_v29 = vadd.f32 1.0, %v2631_v18  ;;  %v2642_v46 = vadd.f32 %v2136_v40, %v670_v15 }
 0x12b   :  { %1806 = vpow2.f32 %v1012_v63  ;;  %v1008_v47 = vmul.f32 1.442695, %v900_v60  ;;  %v871_v34 = vsub.f32 0.0, %v807_v62  ;;  %v903_v56 = vsub.f32 0.0, %v839_v16 }
 0x12c   :  { %v1795_v21 = vpop.eup %1794  ;;  %1808 = vpow2.f32 %v944_v30  ;;  %v2647_v53 = vadd.f32 %v2136_v40, %v702_v43  ;;  %v675_v60 = vmul.f32 %v2292_v14, %v2131_v38  ;;  %v707_v62 = vmul.f32 %v2294_v19, %v2131_v38 }
 0x12d   :  { %v1797_v39 = vpop.eup %1796  ;;  %v1248_v5 = vmul.f32 %v1795_v21, %v2548_v42  ;;  %1810 = vrcp.f32 %v1089_v29  ;;  %v950_v23 = vmul.f32 1.442695, %v871_v34  ;;  %v1014_v27 = vmul.f32 1.442695, %v903_v56 }
 0x12e   :  { %v1280_v7 = vmul.f32 %v1797_v39, %v2554_v50  ;;  %1812 = vpow2.f32 %v1008_v47  ;;  %v805_v50 = vand.u32 2147483647, %v2642_v46  ;;  %v837_v1 = vand.u32 2147483647, %v2647_v53 }
 0x12f   :  { %v1312_v22 = vsel %vm1184_vm7, %v1795_v21, %v1248_v5  ;;  %v2649_v42 = vpop.eup %1798  ;;  %1814 = vpow2.f32 %v950_v23  ;;  %v2674_v47 = vadd.f32 %v2136_v40, %v675_v60  ;;  %vm1217_vm12 = vcmp.ge.f32.partialorder %v2495_v8, 0.0  ;;  %v3323_v60 = vld [vmem:[#allocation2_spill] sm:$0xff] }
 0x130   :  { %v1376_v6 = vmul.f32 %v1312_v22, %v2314_v61  ;;  %v1344_v31 = vsel %vm1216_vm8, %v1797_v39, %v1280_v7  ;;  %v1801_v2 = vpop.eup %1800  ;;  %v1062_v17 = vadd.f32 1.0, %v2649_v42  ;;  %1816 = vpow2.f32 %v1014_v27 }
 0x131   :  { %v1408_v37 = vmul.f32 %v1344_v31, %v2417_v26  ;;  %v1803_v33 = vpop.eup %1802  ;;  %v1251_v61 = vmul.f32 %v1801_v2, %v2589_v12  ;;  %v869_v63 = vsub.f32 0.0, %v805_v50  ;;  %v901_v12 = vsub.f32 0.0, %v837_v1 }
 0x132   :  { %1441 = vst.msk [vmem:[%s3307_s4 + $0x40] sm:$0xff] %vm1432_vm4, %v1376_v6  ;;  %v1283_v26 = vmul.f32 %v1803_v33, %v2599_v41  ;;  %1818 = vrcp.f32 %v1062_v17  ;;  %v673_v41 = vmul.f32 %v2131_v38, %v2299_v24  ;;  %v810_v24 = vand.u32 2147483647, %v2674_v47 }
 0x133   :  { %1473 = vst.msk [vmem:[%s3307_s4 + $0x140] sm:$0xff] %vm1432_vm4, %v1408_v37  ;;  %v1315_v15 = vsel %vm1187_vm9, %v1801_v2, %v1251_v61  ;;  %v946_v30 = vmul.f32 1.442695, %v869_v63  ;;  %v1010_v5 = vmul.f32 1.442695, %v901_v12  ;;  %vm1190_vm13 = vcmp.ge.f32.partialorder %v2536_v10, 0.0 }
 0x134   :  { %v1805_v43 = vpop.eup %1804  ;;  %v1379_v21 = vmul.f32 %v1315_v15, %v2451_v9  ;;  %v1347_v29 = vsel %vm1219_vm10, %v1803_v33, %v1283_v26  ;;  %v2692_v9 = vadd.f32 %v2136_v40, %v707_v62  ;;  %v2700_v56 = vadd.f32 %v2136_v40, %v673_v41  ;;  %v2733_v12 = vld [vmem:[%s3305_s2] ss:$0 sm:$0xff]  ;;  %v3324_v62 = vld [vmem:[#allocation3_spill] sm:$0xff] }
 0x135   :  { %v2678_v16 = vpop.eup %1806  ;;  %v1411_v14 = vmul.f32 %v1347_v29, %v2463_v3  ;;  %v1249_v39 = vmul.f32 %v1805_v43, %v2614_v35  ;;  %1820 = vpow2.f32 %v946_v30  ;;  %v874_v31 = vsub.f32 0.0, %v810_v24 }
 0x136   :  { %v2682_v34 = vpop.eup %1808  ;;  %1444 = vst.msk [vmem:[%s3307_s4 + $0x58] sm:$0xff] %vm1432_vm4, %v1379_v21  ;;  %v1094_v19 = vadd.f32 1.0, %v2678_v16  ;;  %1822 = vpow2.f32 %v1010_v5  ;;  %v842_v50 = vand.u32 2147483647, %v2692_v9  ;;  %vm1222_vm14 = vcmp.ge.f32.partialorder %v2583_v0, 0.0 }
 0x137   :  { %v1811_v3 = vpop.eup %1810  ;;  %1476 = vst.msk [vmem:[%s3307_s4 + $0x158] sm:$0xff] %vm1432_vm4, %v1411_v14  ;;  %v1313_v35 = vsel %vm1185_vm11, %v1805_v43, %v1249_v39  ;;  %v1060_v7 = vadd.f32 1.0, %v2682_v34  ;;  %v705_v15 = vmul.f32 %v2131_v38, %v3323_v60  ;;  %v676_v43 = vmul.f32 %v2733_v12, %v3324_v62  ;;  %v2740_v38 = vld [vmem:[%s3306_s3] ss:$0 sm:$0xff] }
 0x138   :  { %v2702_v22 = vpop.eup %1812  ;;  %v1377_v23 = vmul.f32 %v1313_v35, %v2478_v20  ;;  %v1281_v6 = vmul.f32 %v1811_v3, %v2631_v18  ;;  %1824 = vrcp.f32 %v1094_v19  ;;  %v956_v20 = vmul.f32 1.442695, %v874_v31  ;;  %v3326_v19 = vld [vmem:[#allocation5_spill] sm:$0xff] }
 0x139   :  { %1826 = vrcp.f32 %v1060_v7  ;;  %v1092_v27 = vadd.f32 1.0, %v2702_v22  ;;  %v2709_v2 = vpop.eup %1814  ;;  %v808_v18 = vand.u32 2147483647, %v2700_v56  ;;  %v906_v61 = vsub.f32 0.0, %v842_v50 }
 0x13a   :  { %1442 = vst.msk [vmem:[%s3307_s4 + $0x48] sm:$0xff] %vm1432_vm4, %v1377_v23  ;;  %v1345_v40 = vsel %vm1217_vm12, %v1811_v3, %v1281_v6  ;;  %v2717_v37 = vpop.eup %1816  ;;  %v1063_v33 = vadd.f32 1.0, %v2709_v2  ;;  %v2743_v29 = vadd.f32 %v2740_v38, %v705_v15  ;;  %v2752_v5 = vadd.f32 %v2740_v38, %v676_v43 }
 0x13b   :  { %v1409_v17 = vmul.f32 %v1345_v40, %v2495_v8  ;;  %1828 = vrcp.f32 %v1092_v27  ;;  %v1095_v1 = vadd.f32 1.0, %v2717_v37  ;;  %v872_v26 = vsub.f32 0.0, %v808_v18 }
 0x13c   :  { %v1819_v63 = vpop.eup %1818  ;;  %1830 = vpow2.f32 %v956_v20  ;;  %v1020_v30 = vmul.f32 1.442695, %v906_v61  ;;  %v674_v24 = vmul.f32 %v2733_v12, %v3326_v19  ;;  %v840_v7 = vand.u32 2147483647, %v2743_v29 }
 0x13d   :  { %1474 = vst.msk [vmem:[%s3307_s4 + $0x148] sm:$0xff] %vm1432_vm4, %v1409_v17  ;;  %v1254_v8 = vmul.f32 %v1819_v63, %v2649_v42  ;;  %1832 = vrcp.f32 %v1063_v33  ;;  %v952_v21 = vmul.f32 1.442695, %v872_v26  ;;  %v3325_v42 = vld [vmem:[#allocation4_spill] sm:$0xff]  ;;  %vm1188_vm15 = vcmp.ge.f32.partialorder %v2604_v45, 0.0 }
 0x13e   :  { %1834 = vrcp.f32 %v1095_v1  ;;  %v708_v41 = vmul.f32 %v2733_v12, %v3325_v42  ;;  %vm1220_vm0 = vcmp.ge.f32.partialorder %v2610_v54, 0.0  ;;  %v811_v6 = vand.u32 2147483647, %v2752_v5 }
 0x13f   :  { %v2747_v14 = vpop.eup %1820  ;;  %v1318_v39 = vsel %vm1190_vm13, %v1819_v63, %v1254_v8  ;;  %1836 = vpow2.f32 %v1020_v30  ;;  %v904_v50 = vsub.f32 0.0, %v840_v7  ;;  %v2773_v40 = vadd.f32 %v2740_v38, %v674_v24  ;;  %v3327_v24 = vld [vmem:[#allocation6_spill] sm:$0xff] }
 0x140   :  { %v1382_v3 = vmul.f32 %v1318_v39, %v2536_v10  ;;  %v1061_v35 = vadd.f32 1.0, %v2747_v14  ;;  %1838 = vpow2.f32 %v952_v21  ;;  %v2759_v23 = vpop.eup %1822  ;;  %v2765_v31 = vadd.f32 %v2740_v38, %v708_v41 }
 0x141   :  { %v1093_v10 = vadd.f32 1.0, %v2759_v23  ;;  %vm1191_vm1 = vcmp.ge.f32.partialorder %v2623_v36, 0.0  ;;  %v875_v17 = vsub.f32 0.0, %v811_v6  ;;  %v1016_v63 = vmul.f32 1.442695, %v904_v50 }
 0x142   :  { %v1825_v27 = vpop.eup %1824  ;;  %1447 = vst.msk [vmem:[%s3307_s4 + $0x70] sm:$0xff] %vm1432_vm4, %v1382_v3  ;;  %1840 = vrcp.f32 %v1061_v35  ;;  %v843_v33 = vand.u32 2147483647, %v2765_v31  ;;  %v809_v1 = vand.u32 2147483647, %v2773_v40  ;;  %vm1223_vm2 = vcmp.ge.f32.partialorder %v2627_v58, 0.0 }
 0x143   :  { %v1827_v20 = vpop.eup %1826  ;;  %v1286_v18 = vmul.f32 %v1825_v27, %v2678_v16  ;;  %1842 = vrcp.f32 %v1093_v10  ;;  %v958_v15 = vmul.f32 1.442695, %v875_v17  ;;  %v706_v3 = vmul.f32 %v2733_v12, %v3327_v24 }
 0x144   :  { %v1252_v61 = vmul.f32 %v1827_v20, %v2682_v34  ;;  %v907_v8 = vsub.f32 0.0, %v843_v33  ;;  %1844 = vpow2.f32 %v1016_v63  ;;  %v679_v6 = vmul.f32 %v2733_v12, %v2344_v51 }
 0x145   :  { %v1829_v26 = vpop.eup %1828  ;;  %v1350_v60 = vsel %vm1222_vm14, %v1825_v27, %v1286_v18  ;;  %1846 = vpow2.f32 %v958_v15  ;;  %vm1189_vm3 = vcmp.ge.f32.partialorder %v2642_v46, 0.0  ;;  %vm1221_vm5 = vcmp.ge.f32.partialorder %v2647_v53, 0.0 }
 0x146   :  { %v2783_v16 = vpop.eup %1830  ;;  %v1414_v30 = vmul.f32 %v1350_v60, %v2583_v0  ;;  %v1316_v62 = vsel %vm1188_vm15, %v1827_v20, %v1252_v61  ;;  %v1284_v34 = vmul.f32 %v1829_v26, %v2702_v22  ;;  %v1022_v41 = vmul.f32 1.442695, %v907_v8 }
 0x147   :  { %v1833_v43 = vpop.eup %1832  ;;  %v1380_v21 = vmul.f32 %v1316_v62, %v2604_v45  ;;  %v1066_v42 = vadd.f32 1.0, %v2783_v16  ;;  %v873_v22 = vsub.f32 0.0, %v809_v1  ;;  %v2824_v20 = vadd.f32 %v2740_v38, %v706_v3 }
 0x148   :  { %v1835_v39 = vpop.eup %1834  ;;  %1479 = vst.msk [vmem:[%s3307_s4 + $0x170] sm:$0xff] %vm1432_vm4, %v1414_v30  ;;  %v1348_v0 = vsel %vm1220_vm0, %v1829_v26, %v1284_v34  ;;  %v1255_v19 = vmul.f32 %v1833_v43, %v2709_v2  ;;  %v2828_v33 = vadd.f32 %v2740_v38, %v679_v6  ;;  %v711_v61 = vmul.f32 %v2733_v12, %v2346_v25 }
 0x149   :  { %v2800_v45 = vpop.eup %1836  ;;  %1445 = vst.msk [vmem:[%s3307_s4 + $0x60] sm:$0xff] %vm1432_vm4, %v1380_v21  ;;  %v1412_v35 = vmul.f32 %v1348_v0, %v2610_v54  ;;  %v1287_v7 = vmul.f32 %v1835_v39, %v2717_v37  ;;  %1848 = vrcp.f32 %v1066_v42  ;;  %v954_v50 = vmul.f32 1.442695, %v873_v22 }
 0x14a   :  { %v2810_v2 = vpop.eup %1838  ;;  %v1319_v27 = vsel %vm1191_vm1, %v1833_v43, %v1255_v19  ;;  %v1098_v10 = vadd.f32 1.0, %v2800_v45  ;;  %1850 = vpow2.f32 %v1022_v41  ;;  %v841_v63 = vand.u32 2147483647, %v2824_v20 }
 0x14b   :  { %1477 = vst.msk [vmem:[%s3307_s4 + $0x160] sm:$0xff] %vm1432_vm4, %v1412_v35  ;;  %v1383_v54 = vmul.f32 %v1319_v27, %v2623_v36  ;;  %v1351_v37 = vsel %vm1223_vm2, %v1835_v39, %v1287_v7  ;;  %v1064_v51 = vadd.f32 1.0, %v2810_v2  ;;  %v814_v25 = vand.u32 2147483647, %v2828_v33 }
 0x14c   :  { %v1841_v18 = vpop.eup %1840  ;;  %v1415_v17 = vmul.f32 %v1351_v37, %v2627_v58  ;;  %1852 = vrcp.f32 %v1098_v10  ;;  %v2846_v1 = vadd.f32 %v2740_v38, %v711_v61  ;;  %v905_v60 = vsub.f32 0.0, %v841_v63 }
 0x14d   :  { %1448 = vst.msk [vmem:[%s3307_s4 + $0x78] sm:$0xff] %vm1432_vm4, %v1383_v54  ;;  %v1253_v36 = vmul.f32 %v1841_v18, %v2747_v14  ;;  %1854 = vrcp.f32 %v1064_v51  ;;  %v1843_v58 = vpop.eup %1842  ;;  %v677_v15 = vmul.f32 %v2733_v12, %v2356_v52  ;;  %vm1194_vm6 = vcmp.ge.f32.partialorder %v2674_v47, 0.0 }
 0x14e   :  { %1480 = vst.msk [vmem:[%s3307_s4 + $0x178] sm:$0xff] %vm1432_vm4, %v1415_v17  ;;  %1856 = vpow2.f32 %v954_v50  ;;  %v1285_v14 = vmul.f32 %v1843_v58, %v2759_v23  ;;  %v2851_v8 = vpop.eup %1844  ;;  %v878_v62 = vsub.f32 0.0, %v814_v25  ;;  %v846_v34 = vand.u32 2147483647, %v2846_v1 }
 0x14f   :  { %v1317_v26 = vsel %vm1189_vm3, %v1841_v18, %v1253_v36  ;;  %v2856_v43 = vpop.eup %1846  ;;  %v1096_v42 = vadd.f32 1.0, %v2851_v8  ;;  %v1018_v41 = vmul.f32 1.442695, %v905_v60  ;;  %v2860_v23 = vadd.f32 %v2740_v38, %v677_v15 }
 0x150   :  { %v1381_v30 = vmul.f32 %v1317_v26, %v2642_v46  ;;  %v1349_v21 = vsel %vm1221_vm5, %v1843_v58, %v1285_v14  ;;  %v1067_v46 = vadd.f32 1.0, %v2856_v43  ;;  %v964_v39 = vmul.f32 1.442695, %v878_v62 }
 0x151   :  { %v1413_v52 = vmul.f32 %v1349_v21, %v2647_v53  ;;  %v910_v0 = vsub.f32 0.0, %v846_v34  ;;  %vm1226_vm7 = vcmp.ge.f32.partialorder %v2692_v9, 0.0  ;;  %1858 = vrcp.f32 %v1096_v42 }
 0x152   :  { %1446 = vst.msk [vmem:[%s3307_s4 + $0x68] sm:$0xff] %vm1432_vm4, %v1381_v30  ;;  %v812_v22 = vand.u32 2147483647, %v2860_v23  ;;  %v709_v24 = vmul.f32 %v2733_v12, %v2358_v59  ;;  %1860 = vrcp.f32 %v1067_v46  ;;  %v680_v7 = vmul.f32 %v2733_v12, %v2368_v28 }
 0x153   :  { %v1849_v19 = vpop.eup %1848  ;;  %1478 = vst.msk [vmem:[%s3307_s4 + $0x168] sm:$0xff] %vm1432_vm4, %v1413_v52  ;;  %v1028_v35 = vmul.f32 1.442695, %v910_v0  ;;  %1862 = vpow2.f32 %v1018_v41  ;;  %vm1192_vm8 = vcmp.ge.f32.partialorder %v2700_v56, 0.0  ;;  %vm1224_vm9 = vcmp.ge.f32.partialorder %v2743_v29, 0.0 }
 0x154   :  { %v2872_v3 = vpop.eup %1850  ;;  %v1258_v53 = vmul.f32 %v1849_v19, %v2783_v16  ;;  %v876_v27 = vsub.f32 0.0, %v812_v22  ;;  %v2883_v59 = vadd.f32 %v2740_v38, %v709_v24  ;;  %1864 = vpow2.f32 %v964_v39 }
 0x155   :  { %v1099_v6 = vadd.f32 1.0, %v2872_v3  ;;  %v2888_v54 = vadd.f32 %v2740_v38, %v680_v7  ;;  %v712_v16 = vmul.f32 %v2733_v12, %v2370_v11  ;;  %v710_v15 = vmul.f32 %v2733_v12, %v2384_v44 }
 0x156   :  { %v1853_v10 = vpop.eup %1852  ;;  %v1322_v50 = vsel %vm1194_vm6, %v1849_v19, %v1258_v53  ;;  %v960_v18 = vmul.f32 1.442695, %v876_v27  ;;  %v844_v36 = vand.u32 2147483647, %v2883_v59  ;;  %vm1195_vm10 = vcmp.ge.f32.partialorder %v2752_v5, 0.0 }
 0x157   :  { %v1855_v37 = vpop.eup %1854  ;;  %v1386_v28 = vmul.f32 %v1322_v50, %v2674_v47  ;;  %v1290_v51 = vmul.f32 %v1853_v10, %v2800_v45  ;;  %1866 = vrcp.f32 %v1099_v6  ;;  %v815_v45 = vand.u32 2147483647, %v2888_v54 }
 0x158   :  { %v2894_v17 = vpop.eup %1856  ;;  %v1256_v61 = vmul.f32 %v1855_v37, %v2810_v2  ;;  %1868 = vpow2.f32 %v1028_v35  ;;  %v908_v2 = vsub.f32 0.0, %v844_v36  ;;  %v2911_v14 = vadd.f32 %v2740_v38, %v712_v16 }
 0x159   :  { %1451 = vst.msk [vmem:[%s3307_s4 + $0x90] sm:$0xff] %vm1432_vm4, %v1386_v28  ;;  %v1354_v11 = vsel %vm1226_vm7, %v1853_v10, %v1290_v51  ;;  %v1065_v47 = vadd.f32 1.0, %v2894_v17  ;;  %1870 = vpow2.f32 %v960_v18  ;;  %v879_v26 = vsub.f32 0.0, %v815_v45 }
 0x15a   :  { %v1418_v63 = vmul.f32 %v1354_v11, %v2692_v9  ;;  %v1320_v58 = vsel %vm1192_vm8, %v1855_v37, %v1256_v61  ;;  %v1024_v60 = vmul.f32 1.442695, %v908_v2  ;;  %v678_v9 = vmul.f32 %v2733_v12, %v2382_v48 }
 0x15b   :  { %v1384_v25 = vmul.f32 %v1320_v58, %v2700_v56  ;;  %1872 = vrcp.f32 %v1065_v47  ;;  %v683_v56 = vmul.f32 %v2733_v12, %v2433_v57  ;;  %v1859_v30 = vpop.eup %1858  ;;  %vm1227_vm11 = vcmp.ge.f32.partialorder %v2765_v31, 0.0 }
 0x15c   :  { %1483 = vst.msk [vmem:[%s3307_s4 + $0x190] sm:$0xff] %vm1432_vm4, %v1418_v63  ;;  %v966_v62 = vmul.f32 1.442695, %v879_v26  ;;  %v847_v34 = vand.u32 2147483647, %v2911_v14  ;;  %v1861_v48 = vpop.eup %1860  ;;  %v1288_v21 = vmul.f32 %v1859_v30, %v2851_v8  ;;  %1874 = vpow2.f32 %v1024_v60 }
 0x15d   :  { %1449 = vst.msk [vmem:[%s3307_s4 + $0x80] sm:$0xff] %vm1432_vm4, %v1384_v25  ;;  %v2932_v44 = vadd.f32 %v2740_v38, %v678_v9  ;;  %v715_v57 = vmul.f32 %v2733_v12, %v2435_v49  ;;  %v2936_v42 = vpop.eup %1862  ;;  %v1259_v41 = vmul.f32 %v1861_v48, %v2856_v43  ;;  %v2940_v46 = vadd.f32 %v2740_v38, %v710_v15 }
 0x15e   :  { %1876 = vpow2.f32 %v966_v62  ;;  %v911_v52 = vsub.f32 0.0, %v847_v34  ;;  %v2942_v39 = vpop.eup %1864  ;;  %v1352_v8 = vsel %vm1224_vm9, %v1859_v30, %v1288_v21  ;;  %v1097_v0 = vadd.f32 1.0, %v2936_v42  ;;  %v3329_v62 = vld [vmem:[#allocation8_spill] sm:$0xff] }
 0x15f   :  { %v813_v19 = vand.u32 2147483647, %v2932_v44  ;;  %v2949_v49 = vadd.f32 %v2740_v38, %v683_v56  ;;  %v1416_v43 = vmul.f32 %v1352_v8, %v2743_v29  ;;  %v1323_v24 = vsel %vm1195_vm10, %v1861_v48, %v1259_v41 }
 0x160   :  { %v1070_v53 = vadd.f32 1.0, %v2942_v39  ;;  %v1030_v35 = vmul.f32 1.442695, %v911_v52  ;;  %v1387_v6 = vmul.f32 %v1323_v24, %v2752_v5  ;;  %1878 = vrcp.f32 %v1097_v0  ;;  %v3330_v0 = vld [vmem:[#allocation9_spill] sm:$0xff] }
 0x161   :  { %v1867_v22 = vpop.eup %1866  ;;  %v877_v10 = vsub.f32 0.0, %v813_v19  ;;  %1481 = vst.msk [vmem:[%s3307_s4 + $0x180] sm:$0xff] %vm1432_vm4, %v1416_v43  ;;  %vm1193_vm12 = vcmp.ge.f32.partialorder %v2773_v40, 0.0  ;;  %v845_v16 = vand.u32 2147483647, %v2940_v46  ;;  %vm1225_vm13 = vcmp.ge.f32.partialorder %v2824_v20, 0.0 }
 0x162   :  { %v2955_v7 = vpop.eup %1868  ;;  %v1291_v27 = vmul.f32 %v1867_v22, %v2872_v3  ;;  %1880 = vrcp.f32 %v1070_v53  ;;  %1452 = vst.msk [vmem:[%s3307_s4 + $0x98] sm:$0xff] %vm1432_vm4, %v1387_v6  ;;  %v818_v61 = vand.u32 2147483647, %v2949_v49  ;;  %v2980_v11 = vadd.f32 %v2740_v38, %v715_v57 }
 0x163   :  { %v2959_v50 = vpop.eup %1870  ;;  %v1102_v29 = vadd.f32 1.0, %v2955_v7  ;;  %1882 = vpow2.f32 %v1030_v35  ;;  %v962_v37 = vmul.f32 1.442695, %v877_v10  ;;  %v909_v18 = vsub.f32 0.0, %v845_v16 }
 0x164   :  { %v1355_v5 = vsel %vm1227_vm11, %v1867_v22, %v1291_v27  ;;  %v1068_v3 = vadd.f32 1.0, %v2959_v50  ;;  %v681_v45 = vmul.f32 %v2733_v12, %v2442_v13  ;;  %vm1198_vm14 = vcmp.ge.f32.partialorder %v2828_v33, 0.0 }
 0x165   :  { %v1873_v28 = vpop.eup %1872  ;;  %v1419_v51 = vmul.f32 %v1355_v5, %v2765_v31  ;;  %1884 = vrcp.f32 %v1102_v29  ;;  %v1026_v47 = vmul.f32 1.442695, %v909_v18  ;;  %v882_v31 = vsub.f32 0.0, %v818_v61 }
 0x166   :  { %v1257_v36 = vmul.f32 %v1873_v28, %v2894_v17  ;;  %1886 = vrcp.f32 %v1068_v3  ;;  %v2988_v63 = vpop.eup %1874  ;;  %v850_v58 = vand.u32 2147483647, %v2980_v11  ;;  %v713_v2 = vmul.f32 %v2733_v12, %v2444_v32  ;;  %v3328_v32 = vld [vmem:[#allocation7_spill] sm:$0xff] }
 0x167   :  { %1484 = vst.msk [vmem:[%s3307_s4 + $0x198] sm:$0xff] %vm1432_vm4, %v1419_v51  ;;  %1888 = vpow2.f32 %v962_v37  ;;  %v1100_v60 = vadd.f32 1.0, %v2988_v63  ;;  %v972_v13 = vmul.f32 1.442695, %v882_v31  ;;  %v3002_v56 = vadd.f32 %v2740_v38, %v681_v45 }
 0x168   :  { %v1321_v17 = vsel %vm1193_vm12, %v1873_v28, %v1257_v36  ;;  %v2996_v25 = vpop.eup %1876  ;;  %1890 = vpow2.f32 %v1026_v47  ;;  %v914_v15 = vsub.f32 0.0, %v850_v58  ;;  %v3005_v30 = vadd.f32 %v2740_v38, %v713_v2  ;;  %v3331_v2 = vld [vmem:[#allocation10_spill] sm:$0xff] }
 0x169   :  { %v1385_v26 = vmul.f32 %v1321_v17, %v2773_v40  ;;  %v1071_v9 = vadd.f32 1.0, %v2996_v25  ;;  %vm1230_vm15 = vcmp.ge.f32.partialorder %v2846_v1, 0.0  ;;  %1892 = vrcp.f32 %v1100_v60 }
 0x16a   :  { %v684_v40 = vmul.f32 %v2733_v12, %v3328_v32  ;;  %v716_v34 = vmul.f32 %v2733_v12, %v3329_v62  ;;  %v1879_v48 = vpop.eup %1878  ;;  %vm1196_vm0 = vcmp.ge.f32.partialorder %v2860_v23, 0.0  ;;  %v1036_v21 = vmul.f32 1.442695, %v914_v15  ;;  %v3332_v62 = vld [vmem:[#allocation11_spill] sm:$0xff] }
 0x16b   :  { %1450 = vst.msk [vmem:[%s3307_s4 + $0x88] sm:$0xff] %vm1432_vm4, %v1385_v26  ;;  %1894 = vrcp.f32 %v1071_v9  ;;  %v816_v57 = vand.u32 2147483647, %v3002_v56  ;;  %v1289_v52 = vmul.f32 %v1879_v48, %v2936_v42  ;;  %v848_v8 = vand.u32 2147483647, %v3005_v30 }
 0x16c   :  { %v1881_v41 = vpop.eup %1880  ;;  %1896 = vpow2.f32 %v972_v13  ;;  %v682_v19 = vmul.f32 %v2733_v12, %v3330_v0  ;;  %v3026_v53 = vadd.f32 %v2740_v38, %v684_v40  ;;  %v3032_v10 = vadd.f32 %v2740_v38, %v716_v34 }
 0x16d   :  { %v3022_v22 = vpop.eup %1882  ;;  %v1262_v43 = vmul.f32 %v1881_v41, %v2942_v39  ;;  %1898 = vpow2.f32 %v1036_v21  ;;  %v880_v24 = vsub.f32 0.0, %v816_v57  ;;  %v1353_v6 = vsel %vm1225_vm13, %v1879_v48, %v1289_v52 }
 0x16e   :  { %v1103_v42 = vadd.f32 1.0, %v3022_v22  ;;  %v912_v27 = vsub.f32 0.0, %v848_v8  ;;  %v1417_v16 = vmul.f32 %v1353_v6, %v2824_v20  ;;  %vm1228_vm1 = vcmp.ge.f32.partialorder %v2883_v59, 0.0 }
 0x16f   :  { %v1885_v35 = vpop.eup %1884  ;;  %v1326_v39 = vsel %vm1198_vm14, %v1881_v41, %v1262_v43  ;;  %v968_v3 = vmul.f32 1.442695, %v880_v24  ;;  %vm1199_vm2 = vcmp.ge.f32.partialorder %v2888_v54, 0.0  ;;  %v3069_v58 = vadd.f32 %v2740_v38, %v682_v19 }
 0x170   :  { %v1887_v29 = vpop.eup %1886  ;;  %v1294_v5 = vmul.f32 %v1885_v35, %v2955_v7  ;;  %v1390_v28 = vmul.f32 %v1326_v39, %v2828_v33  ;;  %1900 = vrcp.f32 %v1103_v42  ;;  %v1032_v18 = vmul.f32 1.442695, %v912_v27  ;;  %1482 = vst.msk [vmem:[%s3307_s4 + $0x188] sm:$0xff] %vm1432_vm4, %v1417_v16 }
 0x171   :  { %v3038_v37 = vpop.eup %1888  ;;  %v1260_v51 = vmul.f32 %v1887_v29, %v2959_v50  ;;  %1902 = vpow2.f32 %v968_v3  ;;  %v819_v7 = vand.u32 2147483647, %v3026_v53  ;;  %vm1231_vm3 = vcmp.ge.f32.partialorder %v2911_v14, 0.0 }
 0x172   :  { %v1358_v20 = vsel %vm1230_vm15, %v1885_v35, %v1294_v5  ;;  %v1069_v61 = vadd.f32 1.0, %v3038_v37  ;;  %v3050_v36 = vpop.eup %1890  ;;  %1455 = vst.msk [vmem:[%s3307_s4 + $0xb0] sm:$0xff] %vm1432_vm4, %v1390_v28  ;;  %1904 = vpow2.f32 %v1032_v18  ;;  %v817_v40 = vand.u32 2147483647, %v3069_v58  ;;  %v3333_v35 = vld [vmem:[#allocation12_spill] sm:$0xff] }
 0x173   :  { %v1422_v33 = vmul.f32 %v1358_v20, %v2846_v1  ;;  %v1324_v50 = vsel %vm1196_vm0, %v1887_v29, %v1260_v51  ;;  %v1101_v31 = vadd.f32 1.0, %v3050_v36  ;;  %v883_v45 = vsub.f32 0.0, %v819_v7  ;;  %v1893_v17 = vpop.eup %1892 }
 0x174   :  { %v1388_v47 = vmul.f32 %v1324_v50, %v2860_v23  ;;  %1906 = vrcp.f32 %v1069_v61  ;;  %v851_v1 = vand.u32 2147483647, %v3032_v10  ;;  %v714_v23 = vmul.f32 %v2733_v12, %v3331_v2 }
 0x175   :  { %1487 = vst.msk [vmem:[%s3307_s4 + $0x1b0] sm:$0xff] %vm1432_vm4, %v1422_v33  ;;  %v1895_v26 = vpop.eup %1894  ;;  %v1292_v60 = vmul.f32 %v1893_v17, %v2988_v63  ;;  %1908 = vrcp.f32 %v1101_v31  ;;  %v974_v13 = vmul.f32 1.442695, %v883_v45  ;;  %v687_v34 = vmul.f32 %v2733_v12, %v3332_v62 }
 0x176   :  { %1453 = vst.msk [vmem:[%s3307_s4 + $0xa0] sm:$0xff] %vm1432_vm4, %v1388_v47  ;;  %v3079_v9 = vpop.eup %1896  ;;  %v1263_v15 = vmul.f32 %v1895_v26, %v2996_v25  ;;  %v915_v32 = vsub.f32 0.0, %v851_v1  ;;  %v3091_v57 = vadd.f32 %v2740_v38, %v714_v23  ;;  %v881_v19 = vsub.f32 0.0, %v817_v40  ;;  %v3334_v47 = vld [vmem:[#allocation13_spill] sm:$0xff] }
 0x177   :  { %v3085_v48 = vpop.eup %1898  ;;  %v1356_v21 = vsel %vm1228_vm1, %v1893_v17, %v1292_v60  ;;  %v1074_v63 = vadd.f32 1.0, %v3079_v9  ;;  %1910 = vpow2.f32 %v974_v13  ;;  %vm1197_vm5 = vcmp.ge.f32.partialorder %v2932_v44, 0.0 }
 0x178   :  { %v1420_v41 = vmul.f32 %v1356_v21, %v2883_v59  ;;  %v1327_v25 = vsel %vm1199_vm2, %v1895_v26, %v1263_v15  ;;  %v1106_v52 = vadd.f32 1.0, %v3085_v48  ;;  %v1038_v8 = vmul.f32 1.442695, %v915_v32  ;;  %v3335_v26 = vld [vmem:[#allocation14_spill] sm:$0xff] }
 0x179   :  { %v1391_v0 = vmul.f32 %v1327_v25, %v2888_v54  ;;  %1912 = vrcp.f32 %v1074_v63  ;;  %v849_v43 = vand.u32 2147483647, %v3091_v57  ;;  %v3105_v59 = vadd.f32 %v2740_v38, %v687_v34 }
 0x17a   :  { %v1901_v24 = vpop.eup %1900  ;;  %1485 = vst.msk [vmem:[%s3307_s4 + $0x1a0] sm:$0xff] %vm1432_vm4, %v1420_v41  ;;  %1914 = vrcp.f32 %v1106_v52  ;;  %v719_v6 = vmul.f32 %v2733_v12, %v3333_v35  ;;  %v970_v27 = vmul.f32 1.442695, %v881_v19  ;;  %vm1229_vm6 = vcmp.ge.f32.partialorder %v2940_v46, 0.0 }
 0x17b   :  { %v3109_v54 = vpop.eup %1902  ;;  %1456 = vst.msk [vmem:[%s3307_s4 + $0xb8] sm:$0xff] %vm1432_vm4, %v1391_v0  ;;  %v1295_v42 = vmul.f32 %v1901_v24, %v3022_v22  ;;  %1916 = vpow2.f32 %v1038_v8  ;;  %v913_v29 = vsub.f32 0.0, %v849_v43  ;;  %v822_v5 = vand.u32 2147483647, %v3105_v59  ;;  %v3337_v43 = vld [vmem:[#allocation16_spill] sm:$0xff] }
 0x17c   :  { %v3116_v16 = vpop.eup %1904  ;;  %v1072_v39 = vadd.f32 1.0, %v3109_v54  ;;  %v3122_v3 = vadd.f32 %v2740_v38, %v719_v6  ;;  %1918 = vpow2.f32 %v970_v27  ;;  %vm1202_vm7 = vcmp.ge.f32.partialorder %v2949_v49, 0.0 }
 0x17d   :  { %v1359_v51 = vsel %vm1231_vm3, %v1901_v24, %v1295_v42  ;;  %v1104_v22 = vadd.f32 1.0, %v3116_v16  ;;  %v1034_v18 = vmul.f32 1.442695, %v913_v29  ;;  %v886_v7 = vsub.f32 0.0, %v822_v5 }
 0x17e   :  { %v1907_v28 = vpop.eup %1906  ;;  %v1423_v20 = vmul.f32 %v1359_v51, %v2911_v14  ;;  %1920 = vrcp.f32 %v1072_v39  ;;  %v854_v50 = vand.u32 2147483647, %v3122_v3  ;;  %v685_v31 = vmul.f32 %v2733_v12, %v3334_v47 }
 0x17f   :  { %v1261_v61 = vmul.f32 %v1907_v28, %v3038_v37  ;;  %v1909_v33 = vpop.eup %1908  ;;  %1922 = vrcp.f32 %v1104_v22  ;;  %v980_v45 = vmul.f32 1.442695, %v886_v7  ;;  %v717_v60 = vmul.f32 %v2733_v12, %v3335_v26 }
 0x180   :  { %1488 = vst.msk [vmem:[%s3307_s4 + $0x1b8] sm:$0xff] %vm1432_vm4, %v1423_v20  ;;  %v1293_v37 = vmul.f32 %v1909_v33, %v3050_v36  ;;  %1924 = vpow2.f32 %v1034_v18  ;;  %v918_v2 = vsub.f32 0.0, %v854_v50  ;;  %v3144_v23 = vadd.f32 %v2740_v38, %v685_v31  ;;  %v3336_v36 = vld [vmem:[#allocation15_spill] sm:$0xff] }
 0x181   :  { %v1325_v14 = vsel %vm1197_vm5, %v1907_v28, %v1261_v61  ;;  %v3140_v17 = vpop.eup %1910  ;;  %1926 = vpow2.f32 %v980_v45  ;;  %v688_v32 = vmul.f32 %v2733_v12, %v3336_v36  ;;  %vm1234_vm8 = vcmp.ge.f32.partialorder %v2980_v11, 0.0 }
 0x182   :  { %v1389_v1 = vmul.f32 %v1325_v14, %v2932_v44  ;;  %v1357_v13 = vsel %vm1229_vm6, %v1909_v33, %v1293_v37  ;;  %v1075_v15 = vadd.f32 1.0, %v3140_v17  ;;  %v1044_v62 = vmul.f32 1.442695, %v918_v2 }
 0x183   :  { %v1913_v40 = vpop.eup %1912  ;;  %v1421_v44 = vmul.f32 %v1357_v13, %v2940_v46  ;;  %v820_v34 = vand.u32 2147483647, %v3144_v23  ;;  %v3162_v41 = vadd.f32 %v2740_v38, %v717_v60  ;;  %v3165_v25 = vadd.f32 %v2740_v38, %v688_v32 }
 0x184   :  { %1454 = vst.msk [vmem:[%s3307_s4 + $0xa8] sm:$0xff] %vm1432_vm4, %v1389_v1  ;;  %v1915_v21 = vpop.eup %1914  ;;  %v1266_v63 = vmul.f32 %v1913_v40, %v3079_v9  ;;  %1928 = vrcp.f32 %v1075_v15  ;;  %vm1200_vm9 = vcmp.ge.f32.partialorder %v3002_v56, 0.0  ;;  %v720_v24 = vmul.f32 %v2733_v12, %v3337_v43 }
 0x185   :  { %v3167_v52 = vpop.eup %1916  ;;  %1486 = vst.msk [vmem:[%s3307_s4 + $0x1a8] sm:$0xff] %vm1432_vm4, %v1421_v44  ;;  %v1298_v46 = vmul.f32 %v1915_v21, %v3085_v48  ;;  %1930 = vpow2.f32 %v1044_v62  ;;  %v884_v9 = vsub.f32 0.0, %v820_v34  ;;  %v852_v19 = vand.u32 2147483647, %v3162_v41 }
 0x186   :  { %v1330_v8 = vsel %vm1202_vm7, %v1913_v40, %v1266_v63  ;;  %v1107_v0 = vadd.f32 1.0, %v3167_v52  ;;  %v3181_v35 = vpop.eup %1918  ;;  %v823_v27 = vand.u32 2147483647, %v3165_v25  ;;  %vm1232_vm10 = vcmp.ge.f32.partialorder %v3005_v30, 0.0 }
 0x187   :  { %v1394_v6 = vmul.f32 %v1330_v8, %v2949_v49  ;;  %v1362_v48 = vsel %vm1234_vm8, %v1915_v21, %v1298_v46  ;;  %v976_v42 = vmul.f32 1.442695, %v884_v9  ;;  %v1073_v5 = vadd.f32 1.0, %v3181_v35 }
 0x188   :  { %v1921_v29 = vpop.eup %1920  ;;  %v1426_v39 = vmul.f32 %v1362_v48, %v2980_v11  ;;  %1932 = vrcp.f32 %v1107_v0  ;;  %v916_v28 = vsub.f32 0.0, %v852_v19  ;;  %v887_v22 = vsub.f32 0.0, %v823_v27 }
 0x189   :  { %v1923_v51 = vpop.eup %1922  ;;  %1459 = vst.msk [vmem:[%s3307_s4 + $0xd0] sm:$0xff] %vm1432_vm4, %v1394_v6  ;;  %v1264_v49 = vmul.f32 %v1921_v29, %v3109_v54  ;;  %1934 = vpow2.f32 %v976_v42  ;;  %v3201_v61 = vadd.f32 %v2740_v38, %v720_v24  ;;  %v686_v50 = vmul.f32 %v2733_v12, %v2518_v4 }
 0x18a   :  { %v1925_v18 = vpop.eup %1924  ;;  %1491 = vst.msk [vmem:[%s3307_s4 + $0x1d0] sm:$0xff] %vm1432_vm4, %v1426_v39  ;;  %v1296_v11 = vmul.f32 %v1923_v51, %v3116_v16  ;;  %1936 = vrcp.f32 %v1073_v5  ;;  %v1040_v20 = vmul.f32 1.442695, %v916_v28  ;;  %v982_v33 = vmul.f32 1.442695, %v887_v22 }
 0x18b   :  { %v1328_v54 = vsel %vm1200_vm9, %v1921_v29, %v1264_v49  ;;  %v1105_v7 = vadd.f32 1.0, %v1925_v18  ;;  %v1927_v47 = vpop.eup %1926  ;;  %v855_v16 = vand.u32 2147483647, %v3201_v61  ;;  %v3215_v4 = vadd.f32 %v2740_v38, %v686_v50 }
 0x18c   :  { %v1392_v31 = vmul.f32 %v1328_v54, %v3002_v56  ;;  %v1360_v14 = vsel %vm1232_vm10, %v1923_v51, %v1296_v11  ;;  %1938 = vpow2.f32 %v1040_v20  ;;  %v1078_v45 = vadd.f32 1.0, %v1927_v47 }
 0x18d   :  { %v1424_v37 = vmul.f32 %v1360_v14, %v3005_v30  ;;  %1940 = vrcp.f32 %v1105_v7  ;;  %v919_v2 = vsub.f32 0.0, %v855_v16  ;;  %v718_v56 = vmul.f32 %v2733_v12, %v2524_v55 }
 0x18e   :  { %v1929_v1 = vpop.eup %1928  ;;  %1457 = vst.msk [vmem:[%s3307_s4 + $0xc0] sm:$0xff] %vm1432_vm4, %v1392_v31  ;;  %1942 = vpow2.f32 %v982_v33  ;;  %vm1203_vm11 = vcmp.ge.f32.partialorder %v3026_v53, 0.0  ;;  %v821_v15 = vand.u32 2147483647, %v3215_v4  ;;  %vm1235_vm12 = vcmp.ge.f32.partialorder %v3032_v10, 0.0 }
 0x18f   :  { %v1931_v26 = vpop.eup %1930  ;;  %1489 = vst.msk [vmem:[%s3307_s4 + $0x1c0] sm:$0xff] %vm1432_vm4, %v1424_v37  ;;  %v1267_v30 = vmul.f32 %v1929_v1, %v3140_v17  ;;  %1944 = vrcp.f32 %v1078_v45  ;;  %v1046_v13 = vmul.f32 1.442695, %v919_v2  ;;  %v3227_v32 = vadd.f32 %v2740_v38, %v718_v56 }
 0x190   :  { %v1110_v60 = vadd.f32 1.0, %v1931_v26  ;;  %v885_v40 = vsub.f32 0.0, %v821_v15  ;;  %vm1201_vm13 = vcmp.ge.f32.partialorder %v3069_v58, 0.0  ;;  %vm1233_vm14 = vcmp.ge.f32.partialorder %v3091_v57, 0.0 }
 0x191   :  { %v1331_v36 = vsel %vm1203_vm11, %v1929_v1, %v1267_v30  ;;  %v853_v17 = vand.u32 2147483647, %v3227_v32  ;;  %vm1206_vm15 = vcmp.ge.f32.partialorder %v3105_v59, 0.0  ;;  %vm1238_vm0 = vcmp.ge.f32.partialorder %v3122_v3, 0.0 }
 0x192   :  { %v1933_v55 = vpop.eup %1932  ;;  %v1395_v12 = vmul.f32 %v1331_v36, %v3026_v53  ;;  %1946 = vrcp.f32 %v1110_v60  ;;  %v978_v21 = vmul.f32 1.442695, %v885_v40  ;;  %vm1204_vm1 = vcmp.ge.f32.partialorder %v3144_v23, 0.0 }
 0x193   :  { %v1935_v44 = vpop.eup %1934  ;;  %v1299_v62 = vmul.f32 %v1933_v55, %v3167_v52  ;;  %1948 = vpow2.f32 %v1046_v13  ;;  %v917_v46 = vsub.f32 0.0, %v853_v17  ;;  %vm1236_vm2 = vcmp.ge.f32.partialorder %v3162_v41, 0.0 }
 0x194   :  { %v1937_v34 = vpop.eup %1936  ;;  %1460 = vst.msk [vmem:[%s3307_s4 + $0xd8] sm:$0xff] %vm1432_vm4, %v1395_v12  ;;  %v1076_v38 = vadd.f32 1.0, %v1935_v44  ;;  %vm1207_vm3 = vcmp.ge.f32.partialorder %v3165_v25, 0.0  ;;  %vm1239_vm5 = vcmp.ge.f32.partialorder %v3201_v61, 0.0  ;;  %vm1205_vm6 = vcmp.ge.f32.partialorder %v3215_v4, 0.0 }
 0x195   :  { %v1363_v63 = vsel %vm1235_vm12, %v1933_v55, %v1299_v62  ;;  %v1265_v53 = vmul.f32 %v1937_v34, %v3181_v35  ;;  %v1042_v43 = vmul.f32 1.442695, %v917_v46  ;;  %vm1237_vm7 = vcmp.ge.f32.partialorder %v3227_v32, 0.0 }
 0x196   :  { %v1939_v9 = vpop.eup %1938  ;;  %v1427_v52 = vmul.f32 %v1363_v63, %v3032_v10  ;;  %1950 = vrcp.f32 %v1076_v38 }
 0x197   :  { %v1941_v8 = vpop.eup %1940  ;;  %v1329_v0 = vsel %vm1201_vm13, %v1937_v34, %v1265_v53  ;;  %v1108_v19 = vadd.f32 1.0, %v1939_v9  ;;  %1952 = vpow2.f32 %v978_v21 }
 0x198   :  { %v1943_v24 = vpop.eup %1942  ;;  %1492 = vst.msk [vmem:[%s3307_s4 + $0x1d8] sm:$0xff] %vm1432_vm4, %v1427_v52  ;;  %v1393_v35 = vmul.f32 %v1329_v0, %v3069_v58  ;;  %v1297_v6 = vmul.f32 %v1941_v8, %v1925_v18 }
 0x199   :  { %v1945_v48 = vpop.eup %1944  ;;  %1954 = vrcp.f32 %v1108_v19  ;;  %v1079_v10 = vadd.f32 1.0, %v1943_v24 }
 0x19a   :  { %1458 = vst.msk [vmem:[%s3307_s4 + $0xc8] sm:$0xff] %vm1432_vm4, %v1393_v35  ;;  %v1361_v42 = vsel %vm1233_vm14, %v1941_v8, %v1297_v6  ;;  %v1270_v27 = vmul.f32 %v1945_v48, %v1927_v47  ;;  %1956 = vpow2.f32 %v1042_v43 }
 0x19b   :  { %v1425_v29 = vmul.f32 %v1361_v42, %v3091_v57  ;;  %1958 = vrcp.f32 %v1079_v10 }
 0x19c   :  { %v1947_v58 = vpop.eup %1946  ;;  %v1334_v39 = vsel %vm1206_vm15, %v1945_v48, %v1270_v27 }
 0x19d   :  { %v1949_v5 = vpop.eup %1948  ;;  %1490 = vst.msk [vmem:[%s3307_s4 + $0x1c8] sm:$0xff] %vm1432_vm4, %v1425_v29  ;;  %v1398_v28 = vmul.f32 %v1334_v39, %v3105_v59  ;;  %v1302_v51 = vmul.f32 %v1947_v58, %v1931_v26 }
 0x19e   :  { %v1111_v49 = vadd.f32 1.0, %v1949_v5 }
 0x19f   :  { %1463 = vst.msk [vmem:[%s3307_s4 + $0xf0] sm:$0xff] %vm1432_vm4, %v1398_v28  ;;  %v1366_v57 = vsel %vm1238_vm0, %v1947_v58, %v1302_v51 }
 0x1a0   :  { %v1951_v22 = vpop.eup %1950  ;;  %v1430_v18 = vmul.f32 %v1366_v57, %v3122_v3  ;;  %1960 = vrcp.f32 %v1111_v49 }
 0x1a1   :  { %v1953_v11 = vpop.eup %1952  ;;  %v1268_v20 = vmul.f32 %v1951_v22, %v1935_v44 }
 0x1a2   :  { %1495 = vst.msk [vmem:[%s3307_s4 + $0x1f0] sm:$0xff] %vm1432_vm4, %v1430_v18  ;;  %v1077_v59 = vadd.f32 1.0, %v1953_v11 }
 0x1a3   :  { %v1955_v54 = vpop.eup %1954  ;;  %v1332_v7 = vsel %vm1204_vm1, %v1951_v22, %v1268_v20 }
 0x1a4   :  { %v1957_v33 = vpop.eup %1956  ;;  %v1396_v50 = vmul.f32 %v1332_v7, %v3144_v23  ;;  %v1300_v47 = vmul.f32 %v1955_v54, %v1939_v9  ;;  %1962 = vrcp.f32 %v1077_v59 }
 0x1a5   :  { %v1959_v31 = vpop.eup %1958  ;;  %v1109_v3 = vadd.f32 1.0, %v1957_v33 }
 0x1a6   :  { %1461 = vst.msk [vmem:[%s3307_s4 + $0xe0] sm:$0xff] %vm1432_vm4, %v1396_v50  ;;  %v1364_v14 = vsel %vm1236_vm2, %v1955_v54, %v1300_v47  ;;  %v1271_v16 = vmul.f32 %v1959_v31, %v1943_v24 }
 0x1a7   :  { %v1428_v37 = vmul.f32 %v1364_v14, %v3162_v41  ;;  %1964 = vrcp.f32 %v1109_v3 }
 0x1a8   :  { %v1335_v45 = vsel %vm1207_vm3, %v1959_v31, %v1271_v16 }
 0x1a9   :  { %1493 = vst.msk [vmem:[%s3307_s4 + $0x1e0] sm:$0xff] %vm1432_vm4, %v1428_v37  ;;  %v1399_v23 = vmul.f32 %v1335_v45, %v3165_v25 }
 0x1aa   :  { %v1961_v1 = vpop.eup %1960 }
 0x1ab   :  { %1464 = vst.msk [vmem:[%s3307_s4 + $0xf8] sm:$0xff] %vm1432_vm4, %v1399_v23  ;;  %v1303_v2 = vmul.f32 %v1961_v1, %v1949_v5 }
 0x1ad   :  { %v1367_v41 = vsel %vm1239_vm5, %v1961_v1, %v1303_v2 }
 0x1ae   :  { %v1963_v56 = vpop.eup %1962  ;;  %v1431_v26 = vmul.f32 %v1367_v41, %v3201_v61 }
 0x1af   :  { %v1269_v30 = vmul.f32 %v1963_v56, %v1953_v11 }
 0x1b0   :  { %1496 = vst.msk [vmem:[%s3307_s4 + $0x1f8] sm:$0xff] %vm1432_vm4, %v1431_v26 }
 0x1b1   :  { %v1965_v25 = vpop.eup %1964  ;;  %v1333_v60 = vsel %vm1205_vm6, %v1963_v56, %v1269_v30 }
 0x1b2   :  { %v1397_v13 = vmul.f32 %v1333_v60, %v3215_v4  ;;  %v1301_v15 = vmul.f32 %v1965_v25, %v1957_v33 }
 0x1b4   :  { %1462 = vst.msk [vmem:[%s3307_s4 + $0xe8] sm:$0xff] %vm1432_vm4, %v1397_v13  ;;  %v1365_v61 = vsel %vm1237_vm7, %v1965_v25, %v1301_v15 }
 0x1b5   :  { %v1429_v36 = vmul.f32 %v1365_v61, %v3227_v32 }
 0x1b7   :  { %1494 = vst.msk [vmem:[%s3307_s4 + $0x1e8] sm:$0xff] %vm1432_vm4, %v1429_v36 }

</bundles_post_ra>
